<compile_context>
chip_gen: v7x
topology: tpu7x:2x2x1
jax: 0.10.0
libtpu: 0.0.40
codegen_flags: <defaults>
</compile_context>

<pallas_src>
import functools

import numpy as np
import jax
import jax.numpy as jnp
from jax import lax
from jax.experimental import pallas as pl
from jax.experimental.pallas import tpu as pltpu

# ----- kornia.losses.MS_SSIMLoss default hyper-parameters (deterministic) -----
SIGMAS = (0.5, 1.0, 2.0, 4.0, 8.0)
DATA_RANGE = 1.0
C1 = (0.01 * DATA_RANGE) ** 2
C2 = (0.03 * DATA_RANGE) ** 2
ALPHA = 0.025
COMPENSATION = 200.0
FILTER_SIZE = int(4 * SIGMAS[-1] + 1)   # 33
PAD = int(2 * SIGMAS[-1])               # 16  -> "same" output size
NUM_CH = 3                              # kornia MS_SSIMLoss assumes RGB (groups=3)
NUM_SIG = len(SIGMAS)

# kornia stores the 15 masks as [s0_r, s0_g, s0_b, s1_r, ...] and runs a groups=3
# conv (15 outputs, 5 per group), so output channel o uses sigma o//3 and reads
# input channel o//5.  Unique (sigma, channel) pairs grouped BY SIGMA with their
# multiplicity inside prod(cs); the last pair (sigma idx 4, ch 2) also forms
# lM = l^3 and shares its sigma with the Gaussian-L1 conv, so it is fused with
# that conv in the kernel.
#   (sigma_idx, ((channel, multiplicity), ...))
_SIGMA_GROUPS = (
    (0, ((0, 3),)),
    (1, ((0, 2), (1, 1))),
    (2, ((1, 3),)),
    (3, ((1, 1), (2, 2))),
)
_LAST_SI, _LAST_CI, _LAST_MULT = NUM_SIG - 1, NUM_CH - 1, 3


def _gauss_1d(sigma):
    coords = np.arange(FILTER_SIZE, dtype=np.float64) - FILTER_SIZE // 2
    g = np.exp(-(coords ** 2) / (2.0 * sigma ** 2))
    return (g / g.sum()).astype(np.float32)


def _band_matrices(n):
    """A[s, i, j] = g_s[j - i + PAD] so that  A @ x  == 1-D 'same' conv with zero pad."""
    A = np.zeros((NUM_SIG, n, n), np.float32)
    for s, sigma in enumerate(SIGMAS):
        g = _gauss_1d(sigma)
        for i in range(n):
            lo = max(0, i - PAD)
            hi = min(n, i - PAD + FILTER_SIZE)
            for j in range(lo, hi):
                A[s, i, j] = g[j - i + PAD]
    return jnp.asarray(A)


def _round_up(v, m):
    return ((v + m - 1) // m) * m


# --------------------------------- kernel ------------------------------------
def _ms_ssim_l1_kernel(x_ref, y_ref, ah_ref, awt_ref, out_ref, *, hp, wp, h, w):
    x = x_ref[0]   # (3, hp, wp) f32
    y = y_ref[0]

    def gconv_stack(si, maps):
        # Batched separable Gaussian "same" conv of several (hp, wp) maps:
        # one wide row-pass matmul (lane dim = n*wp), restack along H (static
        # 128-aligned lane slices / 8-aligned sublane slices), one tall
        # column-pass matmul.
        n = len(maps)
        s = jnp.concatenate(maps, axis=1)                                  # (hp, n*wp)
        r = jnp.dot(ah_ref[si], s, preferred_element_type=jnp.float32)     # (hp, n*wp)
        r = jnp.concatenate([r[:, k * wp:(k + 1) * wp] for k in range(n)],
                            axis=0)                                        # (n*hp, wp)
        c = jnp.dot(r, awt_ref[si], preferred_element_type=jnp.float32)    # (n*hp, wp)
        return [c[k * hp:(k + 1) * hp, :] for k in range(n)]

    def powi(v, p):      # static integer power, p in {1, 2, 3}
        return v if p == 1 else (v * v if p == 2 else v * v * v)

    # per-channel products computed once (channels are shared across sigmas)
    xx = [x[c] * x[c] for c in range(NUM_CH)]
    yy = [y[c] * y[c] for c in range(NUM_CH)]
    xy = [x[c] * y[c] for c in range(NUM_CH)]

    # ----- contrast-structure product over the 4 sigmas that only need cs ----
    PIcs = None
    for si, chans in _SIGMA_GROUPS:
        maps = []
        for ci, _ in chans:
            maps += [x[ci], y[ci], xx[ci], yy[ci], xy[ci]]
        outs = gconv_stack(si, maps)
        for k, (ci, mult) in enumerate(chans):
            mux, muy, exx, eyy, exy = outs[5 * k:5 * k + 5]
            mux2, muy2, muxy = mux * mux, muy * muy, mux * muy
            sx2, sy2, sxy = exx - mux2, eyy - muy2, exy - muxy
            cs = (2.0 * sxy + C2) * pl.reciprocal(sx2 + sy2 + C2, approx=False)
            csm = powi(cs, mult)
            PIcs = csm if PIcs is None else PIcs * csm

    # ----- last sigma (idx 4, ch 2) fused with the 3 Gaussian-L1 maps --------
    ci = _LAST_CI
    maps = [x[ci], y[ci], xx[ci], yy[ci], xy[ci],
            jnp.abs(x[0] - y[0]), jnp.abs(x[1] - y[1]), jnp.abs(x[2] - y[2])]
    mux, muy, exx, eyy, exy, g0, g1, g2 = gconv_stack(_LAST_SI, maps)
    mux2, muy2, muxy = mux * mux, muy * muy, mux * muy
    sx2, sy2, sxy = exx - mux2, eyy - muy2, exy - muxy
    l = (2.0 * muxy + C1) * pl.reciprocal(mux2 + muy2 + C1, approx=False)
    cs = (2.0 * sxy + C2) * pl.reciprocal(sx2 + sy2 + C2, approx=False)
    PIcs = PIcs * powi(cs, _LAST_MULT)
    lM = l * l * l                         # l[:, -1] * l[:, -2] * l[:, -3]
    gl1 = (g0 + g1 + g2) * (1.0 / NUM_CH)  # Gaussian-weighted L1, mean over channels

    loss_ms_ssim = 1.0 - lM * PIcs
    loss_mix = COMPENSATION * (ALPHA * loss_ms_ssim
                               + (1.0 - ALPHA) / DATA_RANGE * gl1)

    # mask the padded region (conv spill within PAD of the original boundary is
    # nonzero there and must not enter the mean)
    if h != hp or w != wp:
        rows = lax.broadcasted_iota(jnp.int32, (hp, wp), 0)
        cols = lax.broadcasted_iota(jnp.int32, (hp, wp), 1)
        loss_mix = jnp.where((rows < h) & (cols < w), loss_mix, 0.0)

    # per-batch partial sum; mean is taken in the wrapper
    out_ref[...] = jnp.zeros_like(out_ref) + jnp.sum(loss_mix)


# -------------------------------- wrapper -------------------------------------
def ms_ssim_l1_loss(img, img2, loss_weight=1.0):
    B, C, H, W = img.shape
    assert C == NUM_CH, "kornia MS_SSIMLoss requires 3-channel (RGB) input"

    # lane-dense padding: W -> multiple of 128, H -> multiple of 8
    Hp = _round_up(H, 8)
    Wp = _round_up(W, 128)
    x = img.astype(jnp.float32)
    y = img2.astype(jnp.float32)
    if (Hp, Wp) != (H, W):
        pad = ((0, 0), (0, 0), (0, Hp - H), (0, Wp - W))
        x = jnp.pad(x, pad)
        y = jnp.pad(y, pad)

    ah = _band_matrices(Hp)                              # (5, Hp, Hp)
    awt = jnp.transpose(_band_matrices(Wp), (0, 2, 1))   # (5, Wp, Wp)  A_w^T

    # advisory cost estimate for the XLA scheduler
    stack_sizes = [sum(5 for _ in chans) for _, chans in _SIGMA_GROUPS] + [5 + NUM_CH]
    mm_flops = sum(2 * Hp * Hp * (n * Wp) + 2 * (n * Hp) * Wp * Wp for n in stack_sizes)
    cost = pl.CostEstimate(
        flops=int(B * (mm_flops + 60 * Hp * Wp)),
        transcendentals=int(B * 8 * Hp * Wp),
        bytes_accessed=int((2 * B * C * Hp * Wp + NUM_SIG * (Hp * Hp + Wp * Wp) + B) * 4),
    )

    # explicit scoped-VMEM budget: double-buffered x/y blocks + band matrices
    # (2 pipeline buffers each) + a generous allowance for live (Hp,Wp) temps
    # (the widest stack keeps ~4 copies of a 10-map slab live).
    vmem_need = (2 * 2 * C * Hp * Wp
                 + 2 * NUM_SIG * (Hp * Hp + Wp * Wp)
                 + 64 * Hp * Wp) * 4
    vmem_limit = int(min(max(vmem_need, 32 * 2 ** 20), 64 * 2 ** 20))

    kernel = functools.partial(_ms_ssim_l1_kernel, hp=Hp, wp=Wp, h=H, w=W)
    out = pl.pallas_call(
        kernel,
        out_shape=jax.ShapeDtypeStruct((B, 1, 1), jnp.float32),
        grid=(B,),
        in_specs=[
            pl.BlockSpec((1, C, Hp, Wp), lambda b: (b, 0, 0, 0)),
            pl.BlockSpec((1, C, Hp, Wp), lambda b: (b, 0, 0, 0)),
            # grid-invariant band matrices (constant index_map -> fetched once)
            pl.BlockSpec((NUM_SIG, Hp, Hp), lambda b: (0, 0, 0)),
            pl.BlockSpec((NUM_SIG, Wp, Wp), lambda b: (0, 0, 0)),
        ],
        out_specs=pl.BlockSpec((1, 1, 1), lambda b: (b, 0, 0)),
        compiler_params=pltpu.CompilerParams(
            dimension_semantics=("parallel",),
            vmem_limit_bytes=vmem_limit,
        ),
        cost_estimate=cost,
    )(x, y, ah, awt)

    return (jnp.sum(out) / float(B * H * W)) * loss_weight   # torch.mean over (B,H,W)


# --------------------------- pure-JAX reference --------------------------------
def _reference(img, img2):
    B, C, H, W = img.shape
    ah = _band_matrices(H)
    aw = _band_matrices(W)

    def gconv(si, v):  # v: (B, H, W)
        return jnp.einsum('ij,bjk,lk->bil', ah[si], v, aw[si])

    l_list, cs_list = [], []
    for o in range(3 * NUM_SIG):
        si, ci = o // 3, o // 5
        xc, yc = img[:, ci], img2[:, ci]
        mux, muy = gconv(si, xc), gconv(si, yc)
        mux2, muy2, muxy = mux * mux, muy * muy, mux * muy
        sx2 = gconv(si, xc * xc) - mux2
        sy2 = gconv(si, yc * yc) - muy2
        sxy = gconv(si, xc * yc) - muxy
        l_list.append((2.0 * muxy + C1) / (mux2 + muy2 + C1))
        cs_list.append((2.0 * sxy + C2) / (sx2 + sy2 + C2))
    lM = l_list[-1] * l_list[-2] * l_list[-3]
    PIcs = cs_list[0]
    for cs in cs_list[1:]:
        PIcs = PIcs * cs
    loss_ms_ssim = 1.0 - lM * PIcs
    gl1 = sum(gconv(NUM_SIG - 1, jnp.abs(img[:, c] - img2[:, c])) for c in range(C)) / C
    loss_mix = COMPENSATION * (ALPHA * loss_ms_ssim + (1.0 - ALPHA) * gl1 / DATA_RANGE)
    return jnp.mean(loss_mix)


if __name__ == "__main__":
    key = jax.random.PRNGKey(0)
    k1, k2 = jax.random.split(key)
    img = jax.random.uniform(k1, (2, 3, 16, 16), dtype=jnp.float32)
    img2 = jax.random.uniform(k2, (2, 3, 16, 16), dtype=jnp.float32)

    loss = ms_ssim_l1_loss(img, img2, loss_weight=1.0)
    loss = jax.block_until_ready(loss)

    ref = _reference(img, img2)
    assert jnp.allclose(loss, ref, rtol=1e-3, atol=1e-3), (float(loss), float(ref))
    print("KERNEL_OK")
</pallas_src>

<mosaic_0001>
module attributes {stable_mosaic.version = 11 : i64} {
  func.func @_ms_ssim_l1_kernel(%arg0: i32, %arg1: memref<1x3x16x128xf32, #tpu.memory_space<vmem>>, %arg2: memref<1x3x16x128xf32, #tpu.memory_space<vmem>>, %arg3: memref<5x16x16xf32, #tpu.memory_space<vmem>>, %arg4: memref<5x128x128xf32, #tpu.memory_space<vmem>>, %arg5: memref<1x1x1xf32, #tpu.memory_space<vmem>>) attributes {dimension_semantics = [#tpu.dimension_semantics<parallel>], iteration_bounds = array<i64: 2>, scalar_prefetch = 0 : i64, scratch_operands = 0 : i64, tpu.core_type = #tpu.core_type<tc>, window_params = [{transform_indices = @transform_0, window_bounds = array<i64: 1, 3, 16, 128>}, {transform_indices = @transform_1, window_bounds = array<i64: 1, 3, 16, 128>}, {pipeline_mode = #tpu.pipeline_mode<synchronous>, transform_indices = @transform_2, window_bounds = array<i64: 5, 16, 16>}, {pipeline_mode = #tpu.pipeline_mode<synchronous>, transform_indices = @transform_3, window_bounds = array<i64: 5, 128, 128>}, {transform_indices = @transform_4, window_bounds = array<i64: 1, 1, 1>}]} {
    %c0 = arith.constant 0 : index
    %c0_0 = arith.constant 0 : index
    %c0_1 = arith.constant 0 : index
    %c0_2 = arith.constant 0 : index
    %0 = vector.load %arg1[%c0, %c0_0, %c0_1, %c0_2] : memref<1x3x16x128xf32, #tpu.memory_space<vmem>>, vector<1x3x16x128xf32>
    %1 = vector.shape_cast %0 : vector<1x3x16x128xf32> to vector<3x16x128xf32>
    %c0_3 = arith.constant 0 : index
    %c0_4 = arith.constant 0 : index
    %c0_5 = arith.constant 0 : index
    %c0_6 = arith.constant 0 : index
    %2 = vector.load %arg2[%c0_3, %c0_4, %c0_5, %c0_6] : memref<1x3x16x128xf32, #tpu.memory_space<vmem>>, vector<1x3x16x128xf32>
    %3 = vector.shape_cast %2 : vector<1x3x16x128xf32> to vector<3x16x128xf32>
    %4 = vector.extract_strided_slice %1 {offsets = [0, 0, 0], sizes = [1, 16, 128], strides = [1, 1, 1]} : vector<3x16x128xf32> to vector<1x16x128xf32>
    %5 = vector.shape_cast %4 : vector<1x16x128xf32> to vector<16x128xf32>
    %6 = vector.extract_strided_slice %1 {offsets = [0, 0, 0], sizes = [1, 16, 128], strides = [1, 1, 1]} : vector<3x16x128xf32> to vector<1x16x128xf32>
    %7 = vector.shape_cast %6 : vector<1x16x128xf32> to vector<16x128xf32>
    %8 = arith.mulf %5, %7 : vector<16x128xf32>
    %9 = vector.extract_strided_slice %1 {offsets = [1, 0, 0], sizes = [1, 16, 128], strides = [1, 1, 1]} : vector<3x16x128xf32> to vector<1x16x128xf32>
    %10 = vector.shape_cast %9 : vector<1x16x128xf32> to vector<16x128xf32>
    %11 = vector.extract_strided_slice %1 {offsets = [1, 0, 0], sizes = [1, 16, 128], strides = [1, 1, 1]} : vector<3x16x128xf32> to vector<1x16x128xf32>
    %12 = vector.shape_cast %11 : vector<1x16x128xf32> to vector<16x128xf32>
    %13 = arith.mulf %10, %12 : vector<16x128xf32>
    %14 = vector.extract_strided_slice %1 {offsets = [2, 0, 0], sizes = [1, 16, 128], strides = [1, 1, 1]} : vector<3x16x128xf32> to vector<1x16x128xf32>
    %15 = vector.shape_cast %14 : vector<1x16x128xf32> to vector<16x128xf32>
    %16 = vector.extract_strided_slice %1 {offsets = [2, 0, 0], sizes = [1, 16, 128], strides = [1, 1, 1]} : vector<3x16x128xf32> to vector<1x16x128xf32>
    %17 = vector.shape_cast %16 : vector<1x16x128xf32> to vector<16x128xf32>
    %18 = arith.mulf %15, %17 : vector<16x128xf32>
    %19 = vector.extract_strided_slice %3 {offsets = [0, 0, 0], sizes = [1, 16, 128], strides = [1, 1, 1]} : vector<3x16x128xf32> to vector<1x16x128xf32>
    %20 = vector.shape_cast %19 : vector<1x16x128xf32> to vector<16x128xf32>
    %21 = vector.extract_strided_slice %3 {offsets = [0, 0, 0], sizes = [1, 16, 128], strides = [1, 1, 1]} : vector<3x16x128xf32> to vector<1x16x128xf32>
    %22 = vector.shape_cast %21 : vector<1x16x128xf32> to vector<16x128xf32>
    %23 = arith.mulf %20, %22 : vector<16x128xf32>
    %24 = vector.extract_strided_slice %3 {offsets = [1, 0, 0], sizes = [1, 16, 128], strides = [1, 1, 1]} : vector<3x16x128xf32> to vector<1x16x128xf32>
    %25 = vector.shape_cast %24 : vector<1x16x128xf32> to vector<16x128xf32>
    %26 = vector.extract_strided_slice %3 {offsets = [1, 0, 0], sizes = [1, 16, 128], strides = [1, 1, 1]} : vector<3x16x128xf32> to vector<1x16x128xf32>
    %27 = vector.shape_cast %26 : vector<1x16x128xf32> to vector<16x128xf32>
    %28 = arith.mulf %25, %27 : vector<16x128xf32>
    %29 = vector.extract_strided_slice %3 {offsets = [2, 0, 0], sizes = [1, 16, 128], strides = [1, 1, 1]} : vector<3x16x128xf32> to vector<1x16x128xf32>
    %30 = vector.shape_cast %29 : vector<1x16x128xf32> to vector<16x128xf32>
    %31 = vector.extract_strided_slice %3 {offsets = [2, 0, 0], sizes = [1, 16, 128], strides = [1, 1, 1]} : vector<3x16x128xf32> to vector<1x16x128xf32>
    %32 = vector.shape_cast %31 : vector<1x16x128xf32> to vector<16x128xf32>
    %33 = arith.mulf %30, %32 : vector<16x128xf32>
    %34 = vector.extract_strided_slice %1 {offsets = [0, 0, 0], sizes = [1, 16, 128], strides = [1, 1, 1]} : vector<3x16x128xf32> to vector<1x16x128xf32>
    %35 = vector.shape_cast %34 : vector<1x16x128xf32> to vector<16x128xf32>
    %36 = vector.extract_strided_slice %3 {offsets = [0, 0, 0], sizes = [1, 16, 128], strides = [1, 1, 1]} : vector<3x16x128xf32> to vector<1x16x128xf32>
    %37 = vector.shape_cast %36 : vector<1x16x128xf32> to vector<16x128xf32>
    %38 = arith.mulf %35, %37 : vector<16x128xf32>
    %39 = vector.extract_strided_slice %1 {offsets = [1, 0, 0], sizes = [1, 16, 128], strides = [1, 1, 1]} : vector<3x16x128xf32> to vector<1x16x128xf32>
    %40 = vector.shape_cast %39 : vector<1x16x128xf32> to vector<16x128xf32>
    %41 = vector.extract_strided_slice %3 {offsets = [1, 0, 0], sizes = [1, 16, 128], strides = [1, 1, 1]} : vector<3x16x128xf32> to vector<1x16x128xf32>
    %42 = vector.shape_cast %41 : vector<1x16x128xf32> to vector<16x128xf32>
    %43 = arith.mulf %40, %42 : vector<16x128xf32>
    %44 = vector.extract_strided_slice %1 {offsets = [2, 0, 0], sizes = [1, 16, 128], strides = [1, 1, 1]} : vector<3x16x128xf32> to vector<1x16x128xf32>
    %45 = vector.shape_cast %44 : vector<1x16x128xf32> to vector<16x128xf32>
    %46 = vector.extract_strided_slice %3 {offsets = [2, 0, 0], sizes = [1, 16, 128], strides = [1, 1, 1]} : vector<3x16x128xf32> to vector<1x16x128xf32>
    %47 = vector.shape_cast %46 : vector<1x16x128xf32> to vector<16x128xf32>
    %48 = arith.mulf %45, %47 : vector<16x128xf32>
    %49 = vector.extract_strided_slice %1 {offsets = [0, 0, 0], sizes = [1, 16, 128], strides = [1, 1, 1]} : vector<3x16x128xf32> to vector<1x16x128xf32>
    %50 = vector.shape_cast %49 : vector<1x16x128xf32> to vector<16x128xf32>
    %51 = vector.extract_strided_slice %3 {offsets = [0, 0, 0], sizes = [1, 16, 128], strides = [1, 1, 1]} : vector<3x16x128xf32> to vector<1x16x128xf32>
    %52 = vector.shape_cast %51 : vector<1x16x128xf32> to vector<16x128xf32>
    %53 = tpu.concatenate %50, %52, %8, %23, %38 in 1 : vector<16x128xf32>, vector<16x128xf32>, vector<16x128xf32>, vector<16x128xf32>, vector<16x128xf32> -> vector<16x640xf32>
    %c0_7 = arith.constant 0 : index
    %c0_8 = arith.constant 0 : index
    %c0_9 = arith.constant 0 : index
    %54 = vector.load %arg3[%c0_7, %c0_8, %c0_9] : memref<5x16x16xf32, #tpu.memory_space<vmem>>, vector<1x16x16xf32>
    %55 = vector.shape_cast %54 : vector<1x16x16xf32> to vector<16x16xf32>
    %cst = arith.constant dense<0.000000e+00> : vector<16x640xf32>
    %56 = tpu.matmul %55, %53, %cst {dimension_numbers = #tpu.dot_dimension_numbers<[1], [0], [0], [1], [0, 0, 1, 1], [], []>} : vector<16x16xf32>, vector<16x640xf32>, vector<16x640xf32> -> vector<16x640xf32>
    %57 = vector.extract_strided_slice %56 {offsets = [0, 0], sizes = [16, 128], strides = [1, 1]} : vector<16x640xf32> to vector<16x128xf32>
    %58 = vector.extract_strided_slice %56 {offsets = [0, 128], sizes = [16, 128], strides = [1, 1]} : vector<16x640xf32> to vector<16x128xf32>
    %59 = vector.extract_strided_slice %56 {offsets = [0, 256], sizes = [16, 128], strides = [1, 1]} : vector<16x640xf32> to vector<16x128xf32>
    %60 = vector.extract_strided_slice %56 {offsets = [0, 384], sizes = [16, 128], strides = [1, 1]} : vector<16x640xf32> to vector<16x128xf32>
    %61 = vector.extract_strided_slice %56 {offsets = [0, 512], sizes = [16, 128], strides = [1, 1]} : vector<16x640xf32> to vector<16x128xf32>
    %62 = tpu.concatenate %57, %58, %59, %60, %61 in 0 : vector<16x128xf32>, vector<16x128xf32>, vector<16x128xf32>, vector<16x128xf32>, vector<16x128xf32> -> vector<80x128xf32>
    %c0_10 = arith.constant 0 : index
    %c0_11 = arith.constant 0 : index
    %c0_12 = arith.constant 0 : index
    %63 = vector.load %arg4[%c0_10, %c0_11, %c0_12] : memref<5x128x128xf32, #tpu.memory_space<vmem>>, vector<1x128x128xf32>
    %64 = vector.shape_cast %63 : vector<1x128x128xf32> to vector<128x128xf32>
    %cst_13 = arith.constant dense<0.000000e+00> : vector<80x128xf32>
    %65 = tpu.matmul %62, %64, %cst_13 {dimension_numbers = #tpu.dot_dimension_numbers<[1], [0], [0], [1], [0, 0, 1, 1], [], []>} : vector<80x128xf32>, vector<128x128xf32>, vector<80x128xf32> -> vector<80x128xf32>
    %66 = vector.extract_strided_slice %65 {offsets = [0, 0], sizes = [16, 128], strides = [1, 1]} : vector<80x128xf32> to vector<16x128xf32>
    %67 = vector.extract_strided_slice %65 {offsets = [16, 0], sizes = [16, 128], strides = [1, 1]} : vector<80x128xf32> to vector<16x128xf32>
    %68 = vector.extract_strided_slice %65 {offsets = [32, 0], sizes = [16, 128], strides = [1, 1]} : vector<80x128xf32> to vector<16x128xf32>
    %69 = vector.extract_strided_slice %65 {offsets = [48, 0], sizes = [16, 128], strides = [1, 1]} : vector<80x128xf32> to vector<16x128xf32>
    %70 = vector.extract_strided_slice %65 {offsets = [64, 0], sizes = [16, 128], strides = [1, 1]} : vector<80x128xf32> to vector<16x128xf32>
    %71 = arith.mulf %66, %66 : vector<16x128xf32>
    %72 = arith.mulf %67, %67 : vector<16x128xf32>
    %73 = arith.mulf %66, %67 : vector<16x128xf32>
    %74 = arith.subf %68, %71 : vector<16x128xf32>
    %75 = arith.subf %69, %72 : vector<16x128xf32>
    %76 = arith.subf %70, %73 : vector<16x128xf32>
    %cst_14 = arith.constant 2.000000e+00 : f32
    %77 = vector.broadcast %cst_14 : f32 to vector<16x128xf32>
    %78 = arith.mulf %77, %76 : vector<16x128xf32>
    %cst_15 = arith.constant 8.99999984E-4 : f32
    %79 = vector.broadcast %cst_15 : f32 to vector<16x128xf32>
    %80 = arith.addf %78, %79 : vector<16x128xf32>
    %81 = arith.addf %74, %75 : vector<16x128xf32>
    %cst_16 = arith.constant 8.99999984E-4 : f32
    %82 = vector.broadcast %cst_16 : f32 to vector<16x128xf32>
    %83 = arith.addf %81, %82 : vector<16x128xf32>
    %84 = tpu.reciprocal %83 : vector<16x128xf32> -> vector<16x128xf32>
    %85 = arith.mulf %80, %84 : vector<16x128xf32>
    %86 = arith.mulf %85, %85 : vector<16x128xf32>
    %87 = arith.mulf %86, %85 : vector<16x128xf32>
    %88 = vector.extract_strided_slice %1 {offsets = [0, 0, 0], sizes = [1, 16, 128], strides = [1, 1, 1]} : vector<3x16x128xf32> to vector<1x16x128xf32>
    %89 = vector.shape_cast %88 : vector<1x16x128xf32> to vector<16x128xf32>
    %90 = vector.extract_strided_slice %3 {offsets = [0, 0, 0], sizes = [1, 16, 128], strides = [1, 1, 1]} : vector<3x16x128xf32> to vector<1x16x128xf32>
    %91 = vector.shape_cast %90 : vector<1x16x128xf32> to vector<16x128xf32>
    %92 = vector.extract_strided_slice %1 {offsets = [1, 0, 0], sizes = [1, 16, 128], strides = [1, 1, 1]} : vector<3x16x128xf32> to vector<1x16x128xf32>
    %93 = vector.shape_cast %92 : vector<1x16x128xf32> to vector<16x128xf32>
    %94 = vector.extract_strided_slice %3 {offsets = [1, 0, 0], sizes = [1, 16, 128], strides = [1, 1, 1]} : vector<3x16x128xf32> to vector<1x16x128xf32>
    %95 = vector.shape_cast %94 : vector<1x16x128xf32> to vector<16x128xf32>
    %96 = tpu.concatenate %89, %91, %8, %23, %38, %93, %95, %13, %28, %43 in 1 : vector<16x128xf32>, vector<16x128xf32>, vector<16x128xf32>, vector<16x128xf32>, vector<16x128xf32>, vector<16x128xf32>, vector<16x128xf32>, vector<16x128xf32>, vector<16x128xf32>, vector<16x128xf32> -> vector<16x1280xf32>
    %c1 = arith.constant 1 : index
    %c0_17 = arith.constant 0 : index
    %c0_18 = arith.constant 0 : index
    %97 = vector.load %arg3[%c1, %c0_17, %c0_18] : memref<5x16x16xf32, #tpu.memory_space<vmem>>, vector<1x16x16xf32>
    %98 = vector.shape_cast %97 : vector<1x16x16xf32> to vector<16x16xf32>
    %cst_19 = arith.constant dense<0.000000e+00> : vector<16x1280xf32>
    %99 = tpu.matmul %98, %96, %cst_19 {dimension_numbers = #tpu.dot_dimension_numbers<[1], [0], [0], [1], [0, 0, 1, 1], [], []>} : vector<16x16xf32>, vector<16x1280xf32>, vector<16x1280xf32> -> vector<16x1280xf32>
    %100 = vector.extract_strided_slice %99 {offsets = [0, 0], sizes = [16, 128], strides = [1, 1]} : vector<16x1280xf32> to vector<16x128xf32>
    %101 = vector.extract_strided_slice %99 {offsets = [0, 128], sizes = [16, 128], strides = [1, 1]} : vector<16x1280xf32> to vector<16x128xf32>
    %102 = vector.extract_strided_slice %99 {offsets = [0, 256], sizes = [16, 128], strides = [1, 1]} : vector<16x1280xf32> to vector<16x128xf32>
    %103 = vector.extract_strided_slice %99 {offsets = [0, 384], sizes = [16, 128], strides = [1, 1]} : vector<16x1280xf32> to vector<16x128xf32>
    %104 = vector.extract_strided_slice %99 {offsets = [0, 512], sizes = [16, 128], strides = [1, 1]} : vector<16x1280xf32> to vector<16x128xf32>
    %105 = vector.extract_strided_slice %99 {offsets = [0, 640], sizes = [16, 128], strides = [1, 1]} : vector<16x1280xf32> to vector<16x128xf32>
    %106 = vector.extract_strided_slice %99 {offsets = [0, 768], sizes = [16, 128], strides = [1, 1]} : vector<16x1280xf32> to vector<16x128xf32>
    %107 = vector.extract_strided_slice %99 {offsets = [0, 896], sizes = [16, 128], strides = [1, 1]} : vector<16x1280xf32> to vector<16x128xf32>
    %108 = vector.extract_strided_slice %99 {offsets = [0, 1024], sizes = [16, 128], strides = [1, 1]} : vector<16x1280xf32> to vector<16x128xf32>
    %109 = vector.extract_strided_slice %99 {offsets = [0, 1152], sizes = [16, 128], strides = [1, 1]} : vector<16x1280xf32> to vector<16x128xf32>
    %110 = tpu.concatenate %100, %101, %102, %103, %104, %105, %106, %107, %108, %109 in 0 : vector<16x128xf32>, vector<16x128xf32>, vector<16x128xf32>, vector<16x128xf32>, vector<16x128xf32>, vector<16x128xf32>, vector<16x128xf32>, vector<16x128xf32>, vector<16x128xf32>, vector<16x128xf32> -> vector<160x128xf32>
    %c1_20 = arith.constant 1 : index
    %c0_21 = arith.constant 0 : index
    %c0_22 = arith.constant 0 : index
    %111 = vector.load %arg4[%c1_20, %c0_21, %c0_22] : memref<5x128x128xf32, #tpu.memory_space<vmem>>, vector<1x128x128xf32>
    %112 = vector.shape_cast %111 : vector<1x128x128xf32> to vector<128x128xf32>
    %cst_23 = arith.constant dense<0.000000e+00> : vector<160x128xf32>
    %113 = tpu.matmul %110, %112, %cst_23 {dimension_numbers = #tpu.dot_dimension_numbers<[1], [0], [0], [1], [0, 0, 1, 1], [], []>} : vector<160x128xf32>, vector<128x128xf32>, vector<160x128xf32> -> vector<160x128xf32>
    %114 = vector.extract_strided_slice %113 {offsets = [0, 0], sizes = [16, 128], strides = [1, 1]} : vector<160x128xf32> to vector<16x128xf32>
    %115 = vector.extract_strided_slice %113 {offsets = [16, 0], sizes = [16, 128], strides = [1, 1]} : vector<160x128xf32> to vector<16x128xf32>
    %116 = vector.extract_strided_slice %113 {offsets = [32, 0], sizes = [16, 128], strides = [1, 1]} : vector<160x128xf32> to vector<16x128xf32>
    %117 = vector.extract_strided_slice %113 {offsets = [48, 0], sizes = [16, 128], strides = [1, 1]} : vector<160x128xf32> to vector<16x128xf32>
    %118 = vector.extract_strided_slice %113 {offsets = [64, 0], sizes = [16, 128], strides = [1, 1]} : vector<160x128xf32> to vector<16x128xf32>
    %119 = vector.extract_strided_slice %113 {offsets = [80, 0], sizes = [16, 128], strides = [1, 1]} : vector<160x128xf32> to vector<16x128xf32>
    %120 = vector.extract_strided_slice %113 {offsets = [96, 0], sizes = [16, 128], strides = [1, 1]} : vector<160x128xf32> to vector<16x128xf32>
    %121 = vector.extract_strided_slice %113 {offsets = [112, 0], sizes = [16, 128], strides = [1, 1]} : vector<160x128xf32> to vector<16x128xf32>
    %122 = vector.extract_strided_slice %113 {offsets = [128, 0], sizes = [16, 128], strides = [1, 1]} : vector<160x128xf32> to vector<16x128xf32>
    %123 = vector.extract_strided_slice %113 {offsets = [144, 0], sizes = [16, 128], strides = [1, 1]} : vector<160x128xf32> to vector<16x128xf32>
    %124 = arith.mulf %114, %114 : vector<16x128xf32>
    %125 = arith.mulf %115, %115 : vector<16x128xf32>
    %126 = arith.mulf %114, %115 : vector<16x128xf32>
    %127 = arith.subf %116, %124 : vector<16x128xf32>
    %128 = arith.subf %117, %125 : vector<16x128xf32>
    %129 = arith.subf %118, %126 : vector<16x128xf32>
    %cst_24 = arith.constant 2.000000e+00 : f32
    %130 = vector.broadcast %cst_24 : f32 to vector<16x128xf32>
    %131 = arith.mulf %130, %129 : vector<16x128xf32>
    %cst_25 = arith.constant 8.99999984E-4 : f32
    %132 = vector.broadcast %cst_25 : f32 to vector<16x128xf32>
    %133 = arith.addf %131, %132 : vector<16x128xf32>
    %134 = arith.addf %127, %128 : vector<16x128xf32>
    %cst_26 = arith.constant 8.99999984E-4 : f32
    %135 = vector.broadcast %cst_26 : f32 to vector<16x128xf32>
    %136 = arith.addf %134, %135 : vector<16x128xf32>
    %137 = tpu.reciprocal %136 : vector<16x128xf32> -> vector<16x128xf32>
    %138 = arith.mulf %133, %137 : vector<16x128xf32>
    %139 = arith.mulf %138, %138 : vector<16x128xf32>
    %140 = arith.mulf %87, %139 : vector<16x128xf32>
    %141 = arith.mulf %119, %119 : vector<16x128xf32>
    %142 = arith.mulf %120, %120 : vector<16x128xf32>
    %143 = arith.mulf %119, %120 : vector<16x128xf32>
    %144 = arith.subf %121, %141 : vector<16x128xf32>
    %145 = arith.subf %122, %142 : vector<16x128xf32>
    %146 = arith.subf %123, %143 : vector<16x128xf32>
    %cst_27 = arith.constant 2.000000e+00 : f32
    %147 = vector.broadcast %cst_27 : f32 to vector<16x128xf32>
    %148 = arith.mulf %147, %146 : vector<16x128xf32>
    %cst_28 = arith.constant 8.99999984E-4 : f32
    %149 = vector.broadcast %cst_28 : f32 to vector<16x128xf32>
    %150 = arith.addf %148, %149 : vector<16x128xf32>
    %151 = arith.addf %144, %145 : vector<16x128xf32>
    %cst_29 = arith.constant 8.99999984E-4 : f32
    %152 = vector.broadcast %cst_29 : f32 to vector<16x128xf32>
    %153 = arith.addf %151, %152 : vector<16x128xf32>
    %154 = tpu.reciprocal %153 : vector<16x128xf32> -> vector<16x128xf32>
    %155 = arith.mulf %150, %154 : vector<16x128xf32>
    %156 = arith.mulf %140, %155 : vector<16x128xf32>
    %157 = vector.extract_strided_slice %1 {offsets = [1, 0, 0], sizes = [1, 16, 128], strides = [1, 1, 1]} : vector<3x16x128xf32> to vector<1x16x128xf32>
    %158 = vector.shape_cast %157 : vector<1x16x128xf32> to vector<16x128xf32>
    %159 = vector.extract_strided_slice %3 {offsets = [1, 0, 0], sizes = [1, 16, 128], strides = [1, 1, 1]} : vector<3x16x128xf32> to vector<1x16x128xf32>
    %160 = vector.shape_cast %159 : vector<1x16x128xf32> to vector<16x128xf32>
    %161 = tpu.concatenate %158, %160, %13, %28, %43 in 1 : vector<16x128xf32>, vector<16x128xf32>, vector<16x128xf32>, vector<16x128xf32>, vector<16x128xf32> -> vector<16x640xf32>
    %c2 = arith.constant 2 : index
    %c0_30 = arith.constant 0 : index
    %c0_31 = arith.constant 0 : index
    %162 = vector.load %arg3[%c2, %c0_30, %c0_31] : memref<5x16x16xf32, #tpu.memory_space<vmem>>, vector<1x16x16xf32>
    %163 = vector.shape_cast %162 : vector<1x16x16xf32> to vector<16x16xf32>
    %cst_32 = arith.constant dense<0.000000e+00> : vector<16x640xf32>
    %164 = tpu.matmul %163, %161, %cst_32 {dimension_numbers = #tpu.dot_dimension_numbers<[1], [0], [0], [1], [0, 0, 1, 1], [], []>} : vector<16x16xf32>, vector<16x640xf32>, vector<16x640xf32> -> vector<16x640xf32>
    %165 = vector.extract_strided_slice %164 {offsets = [0, 0], sizes = [16, 128], strides = [1, 1]} : vector<16x640xf32> to vector<16x128xf32>
    %166 = vector.extract_strided_slice %164 {offsets = [0, 128], sizes = [16, 128], strides = [1, 1]} : vector<16x640xf32> to vector<16x128xf32>
    %167 = vector.extract_strided_slice %164 {offsets = [0, 256], sizes = [16, 128], strides = [1, 1]} : vector<16x640xf32> to vector<16x128xf32>
    %168 = vector.extract_strided_slice %164 {offsets = [0, 384], sizes = [16, 128], strides = [1, 1]} : vector<16x640xf32> to vector<16x128xf32>
    %169 = vector.extract_strided_slice %164 {offsets = [0, 512], sizes = [16, 128], strides = [1, 1]} : vector<16x640xf32> to vector<16x128xf32>
    %170 = tpu.concatenate %165, %166, %167, %168, %169 in 0 : vector<16x128xf32>, vector<16x128xf32>, vector<16x128xf32>, vector<16x128xf32>, vector<16x128xf32> -> vector<80x128xf32>
    %c2_33 = arith.constant 2 : index
    %c0_34 = arith.constant 0 : index
    %c0_35 = arith.constant 0 : index
    %171 = vector.load %arg4[%c2_33, %c0_34, %c0_35] : memref<5x128x128xf32, #tpu.memory_space<vmem>>, vector<1x128x128xf32>
    %172 = vector.shape_cast %171 : vector<1x128x128xf32> to vector<128x128xf32>
    %cst_36 = arith.constant dense<0.000000e+00> : vector<80x128xf32>
    %173 = tpu.matmul %170, %172, %cst_36 {dimension_numbers = #tpu.dot_dimension_numbers<[1], [0], [0], [1], [0, 0, 1, 1], [], []>} : vector<80x128xf32>, vector<128x128xf32>, vector<80x128xf32> -> vector<80x128xf32>
    %174 = vector.extract_strided_slice %173 {offsets = [0, 0], sizes = [16, 128], strides = [1, 1]} : vector<80x128xf32> to vector<16x128xf32>
    %175 = vector.extract_strided_slice %173 {offsets = [16, 0], sizes = [16, 128], strides = [1, 1]} : vector<80x128xf32> to vector<16x128xf32>
    %176 = vector.extract_strided_slice %173 {offsets = [32, 0], sizes = [16, 128], strides = [1, 1]} : vector<80x128xf32> to vector<16x128xf32>
    %177 = vector.extract_strided_slice %173 {offsets = [48, 0], sizes = [16, 128], strides = [1, 1]} : vector<80x128xf32> to vector<16x128xf32>
    %178 = vector.extract_strided_slice %173 {offsets = [64, 0], sizes = [16, 128], strides = [1, 1]} : vector<80x128xf32> to vector<16x128xf32>
    %179 = arith.mulf %174, %174 : vector<16x128xf32>
    %180 = arith.mulf %175, %175 : vector<16x128xf32>
    %181 = arith.mulf %174, %175 : vector<16x128xf32>
    %182 = arith.subf %176, %179 : vector<16x128xf32>
    %183 = arith.subf %177, %180 : vector<16x128xf32>
    %184 = arith.subf %178, %181 : vector<16x128xf32>
    %cst_37 = arith.constant 2.000000e+00 : f32
    %185 = vector.broadcast %cst_37 : f32 to vector<16x128xf32>
    %186 = arith.mulf %185, %184 : vector<16x128xf32>
    %cst_38 = arith.constant 8.99999984E-4 : f32
    %187 = vector.broadcast %cst_38 : f32 to vector<16x128xf32>
    %188 = arith.addf %186, %187 : vector<16x128xf32>
    %189 = arith.addf %182, %183 : vector<16x128xf32>
    %cst_39 = arith.constant 8.99999984E-4 : f32
    %190 = vector.broadcast %cst_39 : f32 to vector<16x128xf32>
    %191 = arith.addf %189, %190 : vector<16x128xf32>
    %192 = tpu.reciprocal %191 : vector<16x128xf32> -> vector<16x128xf32>
    %193 = arith.mulf %188, %192 : vector<16x128xf32>
    %194 = arith.mulf %193, %193 : vector<16x128xf32>
    %195 = arith.mulf %194, %193 : vector<16x128xf32>
    %196 = arith.mulf %156, %195 : vector<16x128xf32>
    %197 = vector.extract_strided_slice %1 {offsets = [1, 0, 0], sizes = [1, 16, 128], strides = [1, 1, 1]} : vector<3x16x128xf32> to vector<1x16x128xf32>
    %198 = vector.shape_cast %197 : vector<1x16x128xf32> to vector<16x128xf32>
    %199 = vector.extract_strided_slice %3 {offsets = [1, 0, 0], sizes = [1, 16, 128], strides = [1, 1, 1]} : vector<3x16x128xf32> to vector<1x16x128xf32>
    %200 = vector.shape_cast %199 : vector<1x16x128xf32> to vector<16x128xf32>
    %201 = vector.extract_strided_slice %1 {offsets = [2, 0, 0], sizes = [1, 16, 128], strides = [1, 1, 1]} : vector<3x16x128xf32> to vector<1x16x128xf32>
    %202 = vector.shape_cast %201 : vector<1x16x128xf32> to vector<16x128xf32>
    %203 = vector.extract_strided_slice %3 {offsets = [2, 0, 0], sizes = [1, 16, 128], strides = [1, 1, 1]} : vector<3x16x128xf32> to vector<1x16x128xf32>
    %204 = vector.shape_cast %203 : vector<1x16x128xf32> to vector<16x128xf32>
    %205 = tpu.concatenate %198, %200, %13, %28, %43, %202, %204, %18, %33, %48 in 1 : vector<16x128xf32>, vector<16x128xf32>, vector<16x128xf32>, vector<16x128xf32>, vector<16x128xf32>, vector<16x128xf32>, vector<16x128xf32>, vector<16x128xf32>, vector<16x128xf32>, vector<16x128xf32> -> vector<16x1280xf32>
    %c3 = arith.constant 3 : index
    %c0_40 = arith.constant 0 : index
    %c0_41 = arith.constant 0 : index
    %206 = vector.load %arg3[%c3, %c0_40, %c0_41] : memref<5x16x16xf32, #tpu.memory_space<vmem>>, vector<1x16x16xf32>
    %207 = vector.shape_cast %206 : vector<1x16x16xf32> to vector<16x16xf32>
    %cst_42 = arith.constant dense<0.000000e+00> : vector<16x1280xf32>
    %208 = tpu.matmul %207, %205, %cst_42 {dimension_numbers = #tpu.dot_dimension_numbers<[1], [0], [0], [1], [0, 0, 1, 1], [], []>} : vector<16x16xf32>, vector<16x1280xf32>, vector<16x1280xf32> -> vector<16x1280xf32>
    %209 = vector.extract_strided_slice %208 {offsets = [0, 0], sizes = [16, 128], strides = [1, 1]} : vector<16x1280xf32> to vector<16x128xf32>
    %210 = vector.extract_strided_slice %208 {offsets = [0, 128], sizes = [16, 128], strides = [1, 1]} : vector<16x1280xf32> to vector<16x128xf32>
    %211 = vector.extract_strided_slice %208 {offsets = [0, 256], sizes = [16, 128], strides = [1, 1]} : vector<16x1280xf32> to vector<16x128xf32>
    %212 = vector.extract_strided_slice %208 {offsets = [0, 384], sizes = [16, 128], strides = [1, 1]} : vector<16x1280xf32> to vector<16x128xf32>
    %213 = vector.extract_strided_slice %208 {offsets = [0, 512], sizes = [16, 128], strides = [1, 1]} : vector<16x1280xf32> to vector<16x128xf32>
    %214 = vector.extract_strided_slice %208 {offsets = [0, 640], sizes = [16, 128], strides = [1, 1]} : vector<16x1280xf32> to vector<16x128xf32>
    %215 = vector.extract_strided_slice %208 {offsets = [0, 768], sizes = [16, 128], strides = [1, 1]} : vector<16x1280xf32> to vector<16x128xf32>
    %216 = vector.extract_strided_slice %208 {offsets = [0, 896], sizes = [16, 128], strides = [1, 1]} : vector<16x1280xf32> to vector<16x128xf32>
    %217 = vector.extract_strided_slice %208 {offsets = [0, 1024], sizes = [16, 128], strides = [1, 1]} : vector<16x1280xf32> to vector<16x128xf32>
    %218 = vector.extract_strided_slice %208 {offsets = [0, 1152], sizes = [16, 128], strides = [1, 1]} : vector<16x1280xf32> to vector<16x128xf32>
    %219 = tpu.concatenate %209, %210, %211, %212, %213, %214, %215, %216, %217, %218 in 0 : vector<16x128xf32>, vector<16x128xf32>, vector<16x128xf32>, vector<16x128xf32>, vector<16x128xf32>, vector<16x128xf32>, vector<16x128xf32>, vector<16x128xf32>, vector<16x128xf32>, vector<16x128xf32> -> vector<160x128xf32>
    %c3_43 = arith.constant 3 : index
    %c0_44 = arith.constant 0 : index
    %c0_45 = arith.constant 0 : index
    %220 = vector.load %arg4[%c3_43, %c0_44, %c0_45] : memref<5x128x128xf32, #tpu.memory_space<vmem>>, vector<1x128x128xf32>
    %221 = vector.shape_cast %220 : vector<1x128x128xf32> to vector<128x128xf32>
    %cst_46 = arith.constant dense<0.000000e+00> : vector<160x128xf32>
    %222 = tpu.matmul %219, %221, %cst_46 {dimension_numbers = #tpu.dot_dimension_numbers<[1], [0], [0], [1], [0, 0, 1, 1], [], []>} : vector<160x128xf32>, vector<128x128xf32>, vector<160x128xf32> -> vector<160x128xf32>
    %223 = vector.extract_strided_slice %222 {offsets = [0, 0], sizes = [16, 128], strides = [1, 1]} : vector<160x128xf32> to vector<16x128xf32>
    %224 = vector.extract_strided_slice %222 {offsets = [16, 0], sizes = [16, 128], strides = [1, 1]} : vector<160x128xf32> to vector<16x128xf32>
    %225 = vector.extract_strided_slice %222 {offsets = [32, 0], sizes = [16, 128], strides = [1, 1]} : vector<160x128xf32> to vector<16x128xf32>
    %226 = vector.extract_strided_slice %222 {offsets = [48, 0], sizes = [16, 128], strides = [1, 1]} : vector<160x128xf32> to vector<16x128xf32>
    %227 = vector.extract_strided_slice %222 {offsets = [64, 0], sizes = [16, 128], strides = [1, 1]} : vector<160x128xf32> to vector<16x128xf32>
    %228 = vector.extract_strided_slice %222 {offsets = [80, 0], sizes = [16, 128], strides = [1, 1]} : vector<160x128xf32> to vector<16x128xf32>
    %229 = vector.extract_strided_slice %222 {offsets = [96, 0], sizes = [16, 128], strides = [1, 1]} : vector<160x128xf32> to vector<16x128xf32>
    %230 = vector.extract_strided_slice %222 {offsets = [112, 0], sizes = [16, 128], strides = [1, 1]} : vector<160x128xf32> to vector<16x128xf32>
    %231 = vector.extract_strided_slice %222 {offsets = [128, 0], sizes = [16, 128], strides = [1, 1]} : vector<160x128xf32> to vector<16x128xf32>
    %232 = vector.extract_strided_slice %222 {offsets = [144, 0], sizes = [16, 128], strides = [1, 1]} : vector<160x128xf32> to vector<16x128xf32>
    %233 = arith.mulf %223, %223 : vector<16x128xf32>
    %234 = arith.mulf %224, %224 : vector<16x128xf32>
    %235 = arith.mulf %223, %224 : vector<16x128xf32>
    %236 = arith.subf %225, %233 : vector<16x128xf32>
    %237 = arith.subf %226, %234 : vector<16x128xf32>
    %238 = arith.subf %227, %235 : vector<16x128xf32>
    %cst_47 = arith.constant 2.000000e+00 : f32
    %239 = vector.broadcast %cst_47 : f32 to vector<16x128xf32>
    %240 = arith.mulf %239, %238 : vector<16x128xf32>
    %cst_48 = arith.constant 8.99999984E-4 : f32
    %241 = vector.broadcast %cst_48 : f32 to vector<16x128xf32>
    %242 = arith.addf %240, %241 : vector<16x128xf32>
    %243 = arith.addf %236, %237 : vector<16x128xf32>
    %cst_49 = arith.constant 8.99999984E-4 : f32
    %244 = vector.broadcast %cst_49 : f32 to vector<16x128xf32>
    %245 = arith.addf %243, %244 : vector<16x128xf32>
    %246 = tpu.reciprocal %245 : vector<16x128xf32> -> vector<16x128xf32>
    %247 = arith.mulf %242, %246 : vector<16x128xf32>
    %248 = arith.mulf %196, %247 : vector<16x128xf32>
    %249 = arith.mulf %228, %228 : vector<16x128xf32>
    %250 = arith.mulf %229, %229 : vector<16x128xf32>
    %251 = arith.mulf %228, %229 : vector<16x128xf32>
    %252 = arith.subf %230, %249 : vector<16x128xf32>
    %253 = arith.subf %231, %250 : vector<16x128xf32>
    %254 = arith.subf %232, %251 : vector<16x128xf32>
    %cst_50 = arith.constant 2.000000e+00 : f32
    %255 = vector.broadcast %cst_50 : f32 to vector<16x128xf32>
    %256 = arith.mulf %255, %254 : vector<16x128xf32>
    %cst_51 = arith.constant 8.99999984E-4 : f32
    %257 = vector.broadcast %cst_51 : f32 to vector<16x128xf32>
    %258 = arith.addf %256, %257 : vector<16x128xf32>
    %259 = arith.addf %252, %253 : vector<16x128xf32>
    %cst_52 = arith.constant 8.99999984E-4 : f32
    %260 = vector.broadcast %cst_52 : f32 to vector<16x128xf32>
    %261 = arith.addf %259, %260 : vector<16x128xf32>
    %262 = tpu.reciprocal %261 : vector<16x128xf32> -> vector<16x128xf32>
    %263 = arith.mulf %258, %262 : vector<16x128xf32>
    %264 = arith.mulf %263, %263 : vector<16x128xf32>
    %265 = arith.mulf %248, %264 : vector<16x128xf32>
    %266 = vector.extract_strided_slice %1 {offsets = [2, 0, 0], sizes = [1, 16, 128], strides = [1, 1, 1]} : vector<3x16x128xf32> to vector<1x16x128xf32>
    %267 = vector.shape_cast %266 : vector<1x16x128xf32> to vector<16x128xf32>
    %268 = vector.extract_strided_slice %3 {offsets = [2, 0, 0], sizes = [1, 16, 128], strides = [1, 1, 1]} : vector<3x16x128xf32> to vector<1x16x128xf32>
    %269 = vector.shape_cast %268 : vector<1x16x128xf32> to vector<16x128xf32>
    %270 = vector.extract_strided_slice %1 {offsets = [0, 0, 0], sizes = [1, 16, 128], strides = [1, 1, 1]} : vector<3x16x128xf32> to vector<1x16x128xf32>
    %271 = vector.shape_cast %270 : vector<1x16x128xf32> to vector<16x128xf32>
    %272 = vector.extract_strided_slice %3 {offsets = [0, 0, 0], sizes = [1, 16, 128], strides = [1, 1, 1]} : vector<3x16x128xf32> to vector<1x16x128xf32>
    %273 = vector.shape_cast %272 : vector<1x16x128xf32> to vector<16x128xf32>
    %274 = arith.subf %271, %273 : vector<16x128xf32>
    %275 = math.absf %274 : vector<16x128xf32>
    %276 = vector.extract_strided_slice %1 {offsets = [1, 0, 0], sizes = [1, 16, 128], strides = [1, 1, 1]} : vector<3x16x128xf32> to vector<1x16x128xf32>
    %277 = vector.shape_cast %276 : vector<1x16x128xf32> to vector<16x128xf32>
    %278 = vector.extract_strided_slice %3 {offsets = [1, 0, 0], sizes = [1, 16, 128], strides = [1, 1, 1]} : vector<3x16x128xf32> to vector<1x16x128xf32>
    %279 = vector.shape_cast %278 : vector<1x16x128xf32> to vector<16x128xf32>
    %280 = arith.subf %277, %279 : vector<16x128xf32>
    %281 = math.absf %280 : vector<16x128xf32>
    %282 = vector.extract_strided_slice %1 {offsets = [2, 0, 0], sizes = [1, 16, 128], strides = [1, 1, 1]} : vector<3x16x128xf32> to vector<1x16x128xf32>
    %283 = vector.shape_cast %282 : vector<1x16x128xf32> to vector<16x128xf32>
    %284 = vector.extract_strided_slice %3 {offsets = [2, 0, 0], sizes = [1, 16, 128], strides = [1, 1, 1]} : vector<3x16x128xf32> to vector<1x16x128xf32>
    %285 = vector.shape_cast %284 : vector<1x16x128xf32> to vector<16x128xf32>
    %286 = arith.subf %283, %285 : vector<16x128xf32>
    %287 = math.absf %286 : vector<16x128xf32>
    %288 = tpu.concatenate %267, %269, %18, %33, %48, %275, %281, %287 in 1 : vector<16x128xf32>, vector<16x128xf32>, vector<16x128xf32>, vector<16x128xf32>, vector<16x128xf32>, vector<16x128xf32>, vector<16x128xf32>, vector<16x128xf32> -> vector<16x1024xf32>
    %c4 = arith.constant 4 : index
    %c0_53 = arith.constant 0 : index
    %c0_54 = arith.constant 0 : index
    %289 = vector.load %arg3[%c4, %c0_53, %c0_54] : memref<5x16x16xf32, #tpu.memory_space<vmem>>, vector<1x16x16xf32>
    %290 = vector.shape_cast %289 : vector<1x16x16xf32> to vector<16x16xf32>
    %cst_55 = arith.constant dense<0.000000e+00> : vector<16x1024xf32>
    %291 = tpu.matmul %290, %288, %cst_55 {dimension_numbers = #tpu.dot_dimension_numbers<[1], [0], [0], [1], [0, 0, 1, 1], [], []>} : vector<16x16xf32>, vector<16x1024xf32>, vector<16x1024xf32> -> vector<16x1024xf32>
    %292 = vector.extract_strided_slice %291 {offsets = [0, 0], sizes = [16, 128], strides = [1, 1]} : vector<16x1024xf32> to vector<16x128xf32>
    %293 = vector.extract_strided_slice %291 {offsets = [0, 128], sizes = [16, 128], strides = [1, 1]} : vector<16x1024xf32> to vector<16x128xf32>
    %294 = vector.extract_strided_slice %291 {offsets = [0, 256], sizes = [16, 128], strides = [1, 1]} : vector<16x1024xf32> to vector<16x128xf32>
    %295 = vector.extract_strided_slice %291 {offsets = [0, 384], sizes = [16, 128], strides = [1, 1]} : vector<16x1024xf32> to vector<16x128xf32>
    %296 = vector.extract_strided_slice %291 {offsets = [0, 512], sizes = [16, 128], strides = [1, 1]} : vector<16x1024xf32> to vector<16x128xf32>
    %297 = vector.extract_strided_slice %291 {offsets = [0, 640], sizes = [16, 128], strides = [1, 1]} : vector<16x1024xf32> to vector<16x128xf32>
    %298 = vector.extract_strided_slice %291 {offsets = [0, 768], sizes = [16, 128], strides = [1, 1]} : vector<16x1024xf32> to vector<16x128xf32>
    %299 = vector.extract_strided_slice %291 {offsets = [0, 896], sizes = [16, 128], strides = [1, 1]} : vector<16x1024xf32> to vector<16x128xf32>
    %300 = tpu.concatenate %292, %293, %294, %295, %296, %297, %298, %299 in 0 : vector<16x128xf32>, vector<16x128xf32>, vector<16x128xf32>, vector<16x128xf32>, vector<16x128xf32>, vector<16x128xf32>, vector<16x128xf32>, vector<16x128xf32> -> vector<128x128xf32>
    %c4_56 = arith.constant 4 : index
    %c0_57 = arith.constant 0 : index
    %c0_58 = arith.constant 0 : index
    %301 = vector.load %arg4[%c4_56, %c0_57, %c0_58] : memref<5x128x128xf32, #tpu.memory_space<vmem>>, vector<1x128x128xf32>
    %302 = vector.shape_cast %301 : vector<1x128x128xf32> to vector<128x128xf32>
    %cst_59 = arith.constant dense<0.000000e+00> : vector<128x128xf32>
    %303 = tpu.matmul %300, %302, %cst_59 {dimension_numbers = #tpu.dot_dimension_numbers<[1], [0], [0], [1], [0, 0, 1, 1], [], []>} : vector<128x128xf32>, vector<128x128xf32>, vector<128x128xf32> -> vector<128x128xf32>
    %304 = vector.extract_strided_slice %303 {offsets = [0, 0], sizes = [16, 128], strides = [1, 1]} : vector<128x128xf32> to vector<16x128xf32>
    %305 = vector.extract_strided_slice %303 {offsets = [16, 0], sizes = [16, 128], strides = [1, 1]} : vector<128x128xf32> to vector<16x128xf32>
    %306 = vector.extract_strided_slice %303 {offsets = [32, 0], sizes = [16, 128], strides = [1, 1]} : vector<128x128xf32> to vector<16x128xf32>
    %307 = vector.extract_strided_slice %303 {offsets = [48, 0], sizes = [16, 128], strides = [1, 1]} : vector<128x128xf32> to vector<16x128xf32>
    %308 = vector.extract_strided_slice %303 {offsets = [64, 0], sizes = [16, 128], strides = [1, 1]} : vector<128x128xf32> to vector<16x128xf32>
    %309 = vector.extract_strided_slice %303 {offsets = [80, 0], sizes = [16, 128], strides = [1, 1]} : vector<128x128xf32> to vector<16x128xf32>
    %310 = vector.extract_strided_slice %303 {offsets = [96, 0], sizes = [16, 128], strides = [1, 1]} : vector<128x128xf32> to vector<16x128xf32>
    %311 = vector.extract_strided_slice %303 {offsets = [112, 0], sizes = [16, 128], strides = [1, 1]} : vector<128x128xf32> to vector<16x128xf32>
    %312 = arith.mulf %304, %304 : vector<16x128xf32>
    %313 = arith.mulf %305, %305 : vector<16x128xf32>
    %314 = arith.mulf %304, %305 : vector<16x128xf32>
    %315 = arith.subf %306, %312 : vector<16x128xf32>
    %316 = arith.subf %307, %313 : vector<16x128xf32>
    %317 = arith.subf %308, %314 : vector<16x128xf32>
    %cst_60 = arith.constant 2.000000e+00 : f32
    %318 = vector.broadcast %cst_60 : f32 to vector<16x128xf32>
    %319 = arith.mulf %318, %314 : vector<16x128xf32>
    %cst_61 = arith.constant 9.99999974E-5 : f32
    %320 = vector.broadcast %cst_61 : f32 to vector<16x128xf32>
    %321 = arith.addf %319, %320 : vector<16x128xf32>
    %322 = arith.addf %312, %313 : vector<16x128xf32>
    %cst_62 = arith.constant 9.99999974E-5 : f32
    %323 = vector.broadcast %cst_62 : f32 to vector<16x128xf32>
    %324 = arith.addf %322, %323 : vector<16x128xf32>
    %325 = tpu.reciprocal %324 : vector<16x128xf32> -> vector<16x128xf32>
    %326 = arith.mulf %321, %325 : vector<16x128xf32>
    %cst_63 = arith.constant 2.000000e+00 : f32
    %327 = vector.broadcast %cst_63 : f32 to vector<16x128xf32>
    %328 = arith.mulf %327, %317 : vector<16x128xf32>
    %cst_64 = arith.constant 8.99999984E-4 : f32
    %329 = vector.broadcast %cst_64 : f32 to vector<16x128xf32>
    %330 = arith.addf %328, %329 : vector<16x128xf32>
    %331 = arith.addf %315, %316 : vector<16x128xf32>
    %cst_65 = arith.constant 8.99999984E-4 : f32
    %332 = vector.broadcast %cst_65 : f32 to vector<16x128xf32>
    %333 = arith.addf %331, %332 : vector<16x128xf32>
    %334 = tpu.reciprocal %333 : vector<16x128xf32> -> vector<16x128xf32>
    %335 = arith.mulf %330, %334 : vector<16x128xf32>
    %336 = arith.mulf %335, %335 : vector<16x128xf32>
    %337 = arith.mulf %336, %335 : vector<16x128xf32>
    %338 = arith.mulf %265, %337 : vector<16x128xf32>
    %339 = arith.mulf %326, %326 : vector<16x128xf32>
    %340 = arith.mulf %339, %326 : vector<16x128xf32>
    %341 = arith.addf %309, %310 : vector<16x128xf32>
    %342 = arith.addf %341, %311 : vector<16x128xf32>
    %cst_66 = arith.constant 0.333333343 : f32
    %343 = vector.broadcast %cst_66 : f32 to vector<16x128xf32>
    %344 = arith.mulf %342, %343 : vector<16x128xf32>
    %345 = arith.mulf %340, %338 : vector<16x128xf32>
    %cst_67 = arith.constant 1.000000e+00 : f32
    %346 = vector.broadcast %cst_67 : f32 to vector<16x128xf32>
    %347 = arith.subf %346, %345 : vector<16x128xf32>
    %cst_68 = arith.constant 2.500000e-02 : f32
    %348 = vector.broadcast %cst_68 : f32 to vector<16x128xf32>
    %349 = arith.mulf %348, %347 : vector<16x128xf32>
    %cst_69 = arith.constant 9.750000e-01 : f32
    %350 = vector.broadcast %cst_69 : f32 to vector<16x128xf32>
    %351 = arith.mulf %350, %344 : vector<16x128xf32>
    %352 = arith.addf %349, %351 : vector<16x128xf32>
    %cst_70 = arith.constant 2.000000e+02 : f32
    %353 = vector.broadcast %cst_70 : f32 to vector<16x128xf32>
    %354 = arith.mulf %353, %352 : vector<16x128xf32>
    %355 = tpu.iota {dimensions = array<i32: 0>} : vector<16x128xi32>
    %356 = tpu.iota {dimensions = array<i32: 1>} : vector<16x128xi32>
    %c16_i32 = arith.constant 16 : i32
    %357 = vector.broadcast %c16_i32 : i32 to vector<16x128xi32>
    %358 = arith.cmpi slt, %355, %357 : vector<16x128xi32>
    %c16_i32_71 = arith.constant 16 : i32
    %359 = vector.broadcast %c16_i32_71 : i32 to vector<16x128xi32>
    %360 = arith.cmpi slt, %356, %359 : vector<16x128xi32>
    %361 = arith.andi %358, %360 : vector<16x128xi1>
    %cst_72 = arith.constant 0.000000e+00 : f32
    %362 = vector.broadcast %cst_72 : f32 to vector<16x128xf32>
    %363 = arith.select %361, %354, %362 : vector<16x128xi1>, vector<16x128xf32>
    %cst_73 = arith.constant 0.000000e+00 : f32
    %364 = vector.broadcast %cst_73 : f32 to vector<1x1x1xf32>
    %365 = vector.shape_cast %363 : vector<16x128xf32> to vector<1x16x128xf32>
    %cst_74 = arith.constant dense<0.000000e+00> : vector<1xf32>
    %366 = vector.multi_reduction <add>, %365, %cst_74 [1, 2] : vector<1x16x128xf32> to vector<1xf32>
    %367 = vector.shape_cast %366 : vector<1xf32> to vector<1x1x1xf32>
    %368 = vector.extract %367[0, 0, 0] : f32 from vector<1x1x1xf32>
    %369 = vector.broadcast %368 : f32 to vector<1x1x1xf32>
    %370 = arith.addf %364, %369 : vector<1x1x1xf32>
    %c0_75 = arith.constant 0 : index
    %c0_76 = arith.constant 0 : index
    %c0_77 = arith.constant 0 : index
    %371 = vector.load %arg5[%c0_75, %c0_76, %c0_77] : memref<1x1x1xf32, #tpu.memory_space<vmem>>, vector<1x1x1xf32>
    tpu.vector_store %arg5[%c0_75, %c0_76, %c0_77], %370 {strides = array<i32>} : memref<1x1x1xf32, #tpu.memory_space<vmem>>, vector<1x1x1xf32>,
    return
  }
  func.func @transform_0(%arg0: i32) -> (i32, i32, i32, i32) {
    %c0_i32 = arith.constant 0 : i32
    %c0_i32_0 = arith.constant 0 : i32
    %c0_i32_1 = arith.constant 0 : i32
    %c0_i32_2 = arith.constant 0 : i32
    return %arg0, %c0_i32, %c0_i32_0, %c0_i32_1 : i32, i32, i32, i32
  }
  func.func @transform_1(%arg0: i32) -> (i32, i32, i32, i32) {
    %c0_i32 = arith.constant 0 : i32
    %c0_i32_0 = arith.constant 0 : i32
    %c0_i32_1 = arith.constant 0 : i32
    %c0_i32_2 = arith.constant 0 : i32
    return %arg0, %c0_i32, %c0_i32_0, %c0_i32_1 : i32, i32, i32, i32
  }
  func.func @transform_2(%arg0: i32) -> (i32, i32, i32) {
    %c0_i32 = arith.constant 0 : i32
    %c0_i32_0 = arith.constant 0 : i32
    %c0_i32_1 = arith.constant 0 : i32
    %c0_i32_2 = arith.constant 0 : i32
    return %c0_i32, %c0_i32_0, %c0_i32_1 : i32, i32, i32
  }
  func.func @transform_3(%arg0: i32) -> (i32, i32, i32) {
    %c0_i32 = arith.constant 0 : i32
    %c0_i32_0 = arith.constant 0 : i32
    %c0_i32_1 = arith.constant 0 : i32
    %c0_i32_2 = arith.constant 0 : i32
    return %c0_i32, %c0_i32_0, %c0_i32_1 : i32, i32, i32
  }
  func.func @transform_4(%arg0: i32) -> (i32, i32, i32) {
    %c0_i32 = arith.constant 0 : i32
    %c0_i32_0 = arith.constant 0 : i32
    %c0_i32_1 = arith.constant 0 : i32
    return %arg0, %c0_i32, %c0_i32_0 : i32, i32, i32
  }
}

</mosaic_0001>

<bundles_post_ra>
// kernel: tpu_custom_call.1
= control target key start
LH: loop header
LB: loop body
LE: loop exit
PB: predicated region body
PF: predicated region fallthrough
CT: control target
= control target key end

     0   :  { %9 = vsyncpa [#allocation3], 0  ;;  %s4688_s0 = inlined_call_operand.hbm [shape: f32[2,3,16,128], index: 0, kind: input, shape index: {}]   ;;  %s4689_s1 = inlined_call_operand.hbm [shape: f32[2,3,16,128], index: 1, kind: input, shape index: {}]   ;;  %s4690_s2 = inlined_call_operand.hbm [shape: f32[5,16,16], index: 2, kind: input, shape index: {}]   ;;  %s4691_s3 = inlined_call_operand.hbm [shape: f32[5,128,128], index: 3, kind: input, shape index: {}]   ;;  %s4692_s4 = inlined_call_operand.vmem [shape: f32[2,1,1], index: 4, kind: output, shape index: {}]  }
   0x1   :  { %11 = vsyncpa [#allocation3 + $0x1], 0 }
   0x2   :  { %12 = vsyncpa [#allocation5], 0 }
   0x3   :  { %14 = vsyncpa [#allocation5 + $0x1], 0 }
   0x4   :  { %15 = vsyncpa [#allocation8], 0  ;;  %s4119_s15 = smov 0   ;;  %s4121_s16 = smov 0  }
   0x5   :  { %s4123_s17 = smov 0   ;;  %s4125_s18 = smov 0  }
   0x6 LB: > { %s4138_s19 = sadd.s32 4294967295, %s4085_s18   ;;  %p41_p0 = scmp.ne.s32.totalorder %s4077_s16, %s4073_s15  ;;  %s4085_s18 = sphi %s4125_s18, %s4709_s18   ;;  %s4081_s17 = sphi %s4123_s17, %s4708_s17   ;;  %s4077_s16 = sphi %s4121_s16, %s4707_s16   ;;  %s4073_s15 = sphi %s4119_s15, %s4706_s15  }
   0x7   : > { %p4693_p1 = scmp.eq.s32.totalorder %s4138_s19, 0  ;;  %p3053_p2 = scmp.ge.s32.totalorder %s4085_s18, 1 }
   0x8   : > { %p146_p3 = scmp.lt.s32.totalorder %s4085_s18, 3  ;;  %s4087_s22 = smov [#allocation6]  }
   0x9   : > { %p4146_p4 = por %p4693_p1, %p41_p0  ;;  %s158_s23 = sshll.u32 %s4087_s22, 4  ;;  %s159_s23 = int_to_ptr.vmem [resolvable:$true] %s158_s23 }
   0xa   : > { %p4150_p5 = pnand %p3053_p2, %p146_p3  ;;  %s4088_s25 = smov [#allocation7]  }
   0xb   : > { %s4696_s20 = scalar_select %p4146_p4, 1, 0 }
   0xc   : > { %s4697_s21 = scalar_select %p4150_p5, 1, 0 }
   0xd   : > { %p3835_p6 = pneg %p4150_p5  ;;  %s171_s26 = sshll.u32 %s4088_s25, 4  ;;  %s4162_s26 = int_to_ptr.vmem [resolvable:$true] %s171_s26 }
   0xe   : > { %s3923_s29 = scalar_lea.hbm %s4690_s2, 1280 }
   0xf   : > { %p4158_p7 = pnand %p3835_p6, %p4693_p1  ;;  %p3924_p8 = scmp.ne.s32.totalorder %s4690_s2, %s3923_s29 }
  0x10   : > { %p3930_p12 = scmp.lt.u32.totalorder %s3923_s29, %s4690_s2 }
  0x11   : > { %p3925_p9 = pneg %p4158_p7 }
  0x13   : > { %p3926_p10 = pnand %p3925_p9, %p3924_p8 }
  0x15   : > { %p3927_p11 = pneg %p3926_p10 }
  0x17   : > { %p3932_p13 = pnand %p3930_p12, %p3927_p11 }
  0x19   : > { %3935 = shalt.err (!%p3932_p13)
}
  0x1a   : > { %s3936_s8 = scalar_lea.vmem %s159_s23, 1280  ;;  %p3944_p6 = scmp.lt.s32.totalorder %s159_s23, %s159_s23 }
  0x1b   : > { %p3937_p0 = scmp.ne.s32.totalorder %s159_s23, %s3936_s8  ;;  %p3945_p1 = scmp.lt.s32.totalorder %s3936_s8, %s3936_s8 }
  0x1d   : > { %p3939_p2 = pnand %p3937_p0, %p3925_p9  ;;  %p3946_p4 = por %p3945_p1, %p3944_p6 }
  0x1f   : > { %p3940_p3 = pneg %p3939_p2 }
  0x21   : > { %p3947_p5 = pnand %p3946_p4, %p3940_p3 }
  0x23   : > { %3950 = shalt.err (!%p3947_p5)
}
  0x24   : > { %s4089_s9 = smov 128   ;;  %s4090_s10 = smov 8  }
  0x25   : > { %3838 = dma.hbm_to_vmem [thread:$0]  (!%p4158_p7), %s4690_s2, 1280, %s159_s23, [#allocation5], %s4089_s9, %s4089_s9, %s4090_s10  }
  0x26   : > { %s3951_s15 = scalar_lea.hbm %s4691_s3, 10240 }
  0x27   : > { %p3952_p1 = scmp.ne.s32.totalorder %s4691_s3, %s3951_s15  ;;  %p3958_p8 = scmp.lt.u32.totalorder %s3951_s15, %s4691_s3 }
  0x29   : > { %p3954_p4 = pnand %p3952_p1, %p3925_p9 }
  0x2b   : > { %p3955_p5 = pneg %p3954_p4 }
  0x2d   : > { %p3960_p10 = pnand %p3958_p8, %p3955_p5 }
  0x2f   : > { %3963 = shalt.err (!%p3960_p10)
}
  0x30   : > { %s3964_s23 = scalar_lea.vmem %s4162_s26, 10240  ;;  %p3972_p0 = scmp.lt.s32.totalorder %s4162_s26, %s4162_s26 }
  0x31   : > { %p3965_p11 = scmp.ne.s32.totalorder %s4162_s26, %s3964_s23  ;;  %p3973_p2 = scmp.lt.s32.totalorder %s3964_s23, %s3964_s23 }
  0x33   : > { %p3967_p12 = pnand %p3965_p11, %p3925_p9  ;;  %p3974_p3 = por %p3973_p2, %p3972_p0 }
  0x35   : > { %p3968_p13 = pneg %p3967_p12 }
  0x37   : > { %p3975_p6 = pnand %p3974_p3, %p3968_p13 }
  0x39   : > { %3978 = shalt.err (!%p3975_p6)
}
  0x3a   : > { %3841 = dma.hbm_to_vmem [thread:$0]  (!%p4158_p7), %s4691_s3, 10240, %s4162_s26, [#allocation8], %s4089_s9, %s4089_s9, %s4090_s10  }
  0x3b   : > { %s4218_s24 = sadd.s32 1, %s4085_s18   ;;  %s28_s5 = sadd.s32 1, %s4081_s17 }
  0x3c   : > { %s25_s6 = ssub.s32 %s4085_s18, %s4218_s24  ;;  %p35_p9 = scmp.ne.s32.totalorder %s4081_s17, %s4077_s16 }
  0x3d   : > { %p26_p1 = scmp.eq.s32.totalorder %s25_s6, 0  ;;  %p36_p4 = scmp.eq.s32.totalorder %s4085_s18, 0 }
  0x3e   : > { %p3851_p5 = scmp.lt.s32.totalorder %s4085_s18, 2  ;;  %s185_s7 = sand.u32 1, %s4081_s17  }
  0x3f   : > { %s4229_s8 = scalar_select %p26_p1, %s4081_s17, %s28_s5  }
  0x40   : > { %p37_p8 = por %p36_p4, %p35_p9  ;;  %s4231_s11 = smul.u32 48, %s185_s7 }
  0x41   : > { %s206_s12 = sand.u32 1, %s4085_s18   ;;  %s3817_s13 = smul.u32 768, %s4085_s18 }
  0x42   : > { %p4235_p10 = pnand %p3851_p5, %p37_p8  ;;  %s189_s25 = scalar_lea.vmem [#allocation2], %s4231_s11 }
  0x43   : > { %s4244_s22 = scalar_lea.hbm %s4688_s0, %s3817_s13  ;;  %s196_s27 = sshll.u32 %s189_s25, 4  ;;  %s4247_s27 = int_to_ptr.vmem [resolvable:$true] %s196_s27 }
  0x44   : > { %s4249_s28 = scalar_lea.sflag [#allocation3], %s185_s7  ;;  %s3979_s23 = scalar_lea.hbm %s4244_s22, 768 }
  0x45   : > { %p3980_p7 = scmp.ne.s32.totalorder %s4244_s22, %s3979_s23  ;;  %p3981_p11 = pneg %p4235_p10 }
  0x46   : > { %s3984_s5 = scalar_lea.hbm %s4688_s0, 1536  ;;  %p3985_p0 = scmp.lt.u32.totalorder %s4244_s22, %s4688_s0 }
  0x47   : > { %p3982_p12 = pnand %p3981_p11, %p3980_p7  ;;  %p3986_p2 = scmp.lt.u32.totalorder %s3984_s5, %s3979_s23 }
  0x48   : > { %p3988_p6 = scmp.lt.u32.totalorder %s3979_s23, %s4244_s22 }
  0x49   : > { %p3983_p13 = pneg %p3982_p12  ;;  %p3987_p3 = por %p3986_p2, %p3985_p0 }
  0x4b   : > { %p3989_p9 = por %p3988_p6, %p3987_p3 }
  0x4d   : > { %p3990_p1 = pnand %p3989_p9, %p3983_p13 }
  0x4f   : > { %3993 = shalt.err (!%p3990_p1)
}
  0x50   : > { %s3994_s7 = scalar_lea.vmem %s4247_s27, 768  ;;  %s4091_s15 = smov [#allocation2]  }
  0x51   : > { %p3995_p4 = scmp.ne.s32.totalorder %s4247_s27, %s3994_s7  ;;  %s3999_s25 = sshll.u32 %s4091_s15, 4  ;;  %s4000_s25 = int_to_ptr.vmem [resolvable:$false] %s3999_s25 }
  0x52   : > { %s4001_s29 = scalar_lea.vmem %s4000_s25, 1536  ;;  %p4002_p7 = scmp.lt.s32.totalorder %s4247_s27, %s4000_s25 }
  0x53   : > { %p3997_p5 = pnand %p3995_p4, %p3981_p11  ;;  %p4003_p12 = scmp.lt.s32.totalorder %s4001_s29, %s3994_s7 }
  0x55   : > { %p3998_p8 = pneg %p3997_p5  ;;  %p4004_p0 = por %p4003_p12, %p4002_p7 }
  0x57   : > { %p4005_p2 = pnand %p4004_p0, %p3998_p8 }
  0x59   : > { %4008 = shalt.err (!%p4005_p2)
}
  0x5a   : > { %3845 = dma.hbm_to_vmem [thread:$0]  (!%p4235_p10), %s4244_s22, 768, %s4247_s27, %s4249_s28, %s4089_s9, %s4089_s9, %s4090_s10  }
  0x5b   : > { %s4285_s5 = scalar_lea.hbm %s4689_s1, %s3817_s13  ;;  %s210_s6 = scalar_lea.vmem [#allocation4], %s4231_s11 }
  0x5c   : > { %s217_s14 = sshll.u32 %s210_s6, 4  ;;  %s4292_s7 = scalar_lea.sflag [#allocation5], %s206_s12  ;;  %s4288_s14 = int_to_ptr.vmem [resolvable:$true] %s217_s14 }
  0x5d   : > { %s4009_s15 = scalar_lea.hbm %s4285_s5, 768  ;;  %s4014_s27 = scalar_lea.hbm %s4689_s1, 1536 }
  0x5e   : > { %p4010_p13 = scmp.ne.s32.totalorder %s4285_s5, %s4009_s15  ;;  %p4015_p9 = scmp.lt.u32.totalorder %s4285_s5, %s4689_s1 }
  0x5f   : > { %p4016_p1 = scmp.lt.u32.totalorder %s4014_s27, %s4009_s15  ;;  %p4018_p5 = scmp.lt.u32.totalorder %s4009_s15, %s4285_s5 }
  0x60   : > { %p4012_p3 = pnand %p4010_p13, %p3981_p11 }
  0x61   : > { %p4017_p4 = por %p4016_p1, %p4015_p9 }
  0x62   : > { %p4013_p6 = pneg %p4012_p3 }
  0x63   : > { %p4019_p8 = por %p4018_p5, %p4017_p4 }
  0x65   : > { %p4020_p7 = pnand %p4019_p8, %p4013_p6 }
  0x67   : > { %4023 = shalt.err (!%p4020_p7)
}
  0x68   : > { %s4024_s18 = scalar_lea.vmem %s4288_s14, 768  ;;  %s4092_s11 = smov [#allocation4]  }
  0x69   : > { %p4025_p12 = scmp.ne.s32.totalorder %s4288_s14, %s4024_s18  ;;  %s4029_s12 = sshll.u32 %s4092_s11, 4  ;;  %s4030_s12 = int_to_ptr.vmem [resolvable:$false] %s4029_s12 }
  0x6a   : > { %s4031_s29 = scalar_lea.vmem %s4030_s12, 1536  ;;  %p4032_p13 = scmp.lt.s32.totalorder %s4288_s14, %s4030_s12 }
  0x6b   : > { %p4027_p0 = pnand %p4025_p12, %p3981_p11  ;;  %p4033_p3 = scmp.lt.s32.totalorder %s4031_s29, %s4024_s18 }
  0x6d   : > { %p4028_p2 = pneg %p4027_p0  ;;  %p4034_p9 = por %p4033_p3, %p4032_p13 }
  0x6f   : > { %p4035_p1 = pnand %p4034_p9, %p4028_p2 }
  0x71   : > { %4038 = shalt.err (!%p4035_p1)
}
  0x72   : > { %3848 = dma.hbm_to_vmem [thread:$0]  (!%p4235_p10), %s4285_s5, 768, %s4288_s14, %s4292_s7, %s4089_s9, %s4089_s9, %s4090_s10  }
  0x73   : > { %p4700_p11 = scmp.ne.s32.totalorder %s4697_s21, 0 }
  0x74   : > { %s231_s23 = sand.u32 (!%p4700_p11), 1, %s4077_s16   ;;  %p4701_p6 = scmp.ne.s32.totalorder (!%p4700_p11), %s4696_s20, 0 }
  0x75   : > { %229 = sbr.rel (%p4700_p11) target bundleno = 1151 (0x47f), region = 36  ;;  %s232_s6 = scalar_lea.sflag (!%p4700_p11), [#allocation3], %s231_s23 }
  0x76   : > { %s3820_s30 = smul.u32 (!%p4700_p11), 48, %s231_s23 }
  0x78   : > { %s4324_s15 = scalar_lea.vmem (!%p4700_p11), [#allocation2], %s3820_s30 }
  0x7c   : > { %4056 = dma.done.wait (%p4701_p6), %s232_s6, 768  }
  0x7d   : > { %4058 = vsyncadd (%p4701_p6), %s232_s6, 4294966528  ;;  %s240_s26 = sand.u32 1, %s4138_s19   ;;  %s4331_s9 = scalar_lea.vmem [#allocation4], %s3820_s30 }
  0x7e   : > { %s241_s22 = scalar_lea.sflag [#allocation5], %s240_s26 }
  0x7f   : > { %4060 = dma.done.wait (%p4701_p6), %s241_s22, 768  }
  0x80   : > { %4062 = vsyncadd (%p4701_p6), %s241_s22, 4294966528  ;;  %p4702_p10 = scmp.eq.s32.totalorder %s4138_s19, 0 }
  0x82   : > { %4064 = dma.done.wait (%p4702_p10), [#allocation5], 1280   ;;  %p4703_p4 = pmov %p4702_p10 }
  0x84   : > { %4066 = vsyncadd (%p4703_p4), [#allocation5], 4294966016  ;;  %p4704_p5 = pmov %p4703_p4 }
  0x85   : > { %p4705_p8 = pmov %p4703_p4 }
  0x86   : > { %4068 = dma.done.wait (%p4704_p5), [#allocation8], 10240  }
  0x87   : > { %4070 = vsyncadd (%p4705_p8), [#allocation8], 4294957056  ;;  %v4093_v0 = vmov 0.0   ;;  %v4348_v1 = vld [vmem:[%s4331_s9] sm:$0xff]  ;;  %v4351_v2 = vld [vmem:[%s4331_s9 + $0x8] sm:$0xff]  ;;  %vm315_vm0 = vcmask 130048  }
  0x88   : > { %386 = vmatprep.mubr.f32.mxu0 %v4093_v0  ;;  %463 = vmatprep.mubr.f32.mxu1 %v4093_v0  ;;  %v4354_v3 = vld [vmem:[%s4324_s15] sm:$0xff]  ;;  %v3556_v4 = vpack.c.bf16 %v4351_v2, %v4348_v1  ;;  %v4359_v5 = vld [vmem:[%s4324_s15 + $0x8] sm:$0xff]  ;;  %v301_v6 = vmul.f32 %v4348_v1, %v4348_v1  ;;  %v302_v7 = vmul.f32 %v4351_v2, %v4351_v2  ;;  %v4387_v26 = vld [vmem:[%s4324_s15 + $0x10] sm:$0xff]  ;;  %p280_p7 = scmp.lt.s32.totalorder %s4138_s19, 1  ;;  %vm2949_vm2 = vcmask 0  }
  0x89   : > { %v295_v8 = vmul.f32 %v4354_v3, %v4354_v3  ;;  %v3558_v9 = vpack.c.bf16 %v4359_v5, %v4354_v3  ;;  %v296_v10 = vmul.f32 %v4359_v5, %v4359_v5  ;;  %v307_v11 = vmul.f32 %v4348_v1, %v4354_v3  ;;  %v313_v14 = vld [vmem:[#allocation6] sm:$0xff]  ;;  %v551_v17 = vld [vmem:[#allocation7] sm:$0xff]  ;;  %v552_v18 = vld [vmem:[#allocation7 + $0x8] sm:$0xff] }
  0x8a   : > { %v308_v12 = vmul.f32 %v4351_v2, %v4359_v5  ;;  %3557 = vmatprep.subr.bf16.mxu0 %v3556_v4  ;;  %v3560_v13 = vpack.c.bf16 %v302_v7, %v301_v6  ;;  %v553_v19 = vld [vmem:[#allocation7 + $0x10] sm:$0xff]  ;;  %v554_v20 = vld [vmem:[#allocation7 + $0x18] sm:$0xff]  ;;  %v3568_v21 = vpack.c.bf16 %v552_v18, %v551_v17  ;;  %v555_v24 = vld [vmem:[#allocation7 + $0x20] sm:$0xff]  ;;  %v297_v38 = vmul.f32 %v4387_v26, %v4387_v26  ;;  %s4711_s19 = smov (!%p280_p7, %s4138_s19), 1 }
  0x8b   : > { %3559 = vmatpush1.bf16.msra.mxu0 %v3558_v9  ;;  %v3562_v15 = vpack.c.bf16 %v296_v10, %v295_v8  ;;  %v314_v22 = vld [vmem:[#allocation6 + $0x8] sm:$0xff]  ;;  %v3572_v23 = vpack.c.bf16 %v554_v20, %v553_v19  ;;  %v556_v25 = vld [vmem:[#allocation7 + $0x28] sm:$0xff]  ;;  %v557_v29 = vld [vmem:[#allocation7 + $0x30] sm:$0xff]  ;;  %s282_s10 = scalar_lea.vmem %s4692_s4, %s4711_s19 }
  0x8c   : > { %v4375_v16 = vpack.c.bf16 %v308_v12, %v307_v11  ;;  %3561 = vmatprep.subr.bf16.mxu1 %v3560_v13  ;;  %v3576_v27 = vpack.c.bf16 %v556_v25, %v555_v24  ;;  %v4390_v28 = vld [vmem:[%s4324_s15 + $0x18] sm:$0xff]  ;;  %v711_v31 = vld [vmem:[#allocation6 + $0x10] sm:$0xff]  ;;  %v561_v40 = vld [vmem:[#allocation7 + $0x50] sm:$0xff] }
  0x8d   : > { %3563 = vmatpush1.bf16.msra.mxu1 %v3562_v15  ;;  %v558_v30 = vld [vmem:[#allocation7 + $0x38] sm:$0xff]  ;;  %v4396_v32 = vpack.c.bf16 %v4390_v28, %v4387_v26  ;;  %v559_v34 = vld [vmem:[#allocation7 + $0x40] sm:$0xff]  ;;  %v560_v35 = vld [vmem:[#allocation7 + $0x48] sm:$0xff]  ;;  %v298_v39 = vmul.f32 %v4390_v28, %v4390_v28 }
  0x8e   : > { %3565 = vmatprep.subr.bf16.mxu0 %v4375_v16  ;;  %3062 = vmatmul.mubr.msk.f32.vlgmr.msra.gmra.mrb[0].mxu0 %vm315_vm0, %v313_v14  ;;  %v3580_v33 = vpack.c.bf16 %v558_v30, %v557_v29  ;;  %v712_v36 = vld [vmem:[#allocation6 + $0x18] sm:$0xff]  ;;  %v3584_v37 = vpack.c.bf16 %v560_v35, %v559_v34  ;;  %v562_v41 = vld [vmem:[#allocation7 + $0x58] sm:$0xff]  ;;  %v563_v44 = vld [vmem:[#allocation7 + $0x60] sm:$0xff] }
  0x8f   : > { %392 = vmatprep.mubr.f32.mxu0 %v4093_v0  ;;  %3567 = vmatpush3.bf16.msra.mxu0 %v4375_v16  ;;  %v4407_v42 = vpack.c.bf16 %v298_v39, %v297_v38  ;;  %v3588_v43 = vpack.c.bf16 %v562_v41, %v561_v40  ;;  %v564_v45 = vld [vmem:[#allocation7 + $0x68] sm:$0xff]  ;;  %v4413_v46 = vld [vmem:[%s4331_s9 + $0x10] sm:$0xff]  ;;  %v1342_v57 = vld [vmem:[#allocation6 + $0x28] sm:$0xff] }
  0x90   : > { %3064 = vmatmul.mubr.msk.f32.vlgmr.msra.gmra.mrb[0].mxu1 %vm315_vm0, %v313_v14  ;;  %3601 = vmatprep.subr.bf16.mxu0 %v3556_v4  ;;  %v4416_v47 = vld [vmem:[%s4331_s9 + $0x18] sm:$0xff]  ;;  %v3592_v48 = vpack.c.bf16 %v564_v45, %v563_v44  ;;  %v309_v49 = vmul.f32 %v4413_v46, %v4387_v26  ;;  %v303_v53 = vmul.f32 %v4413_v46, %v4413_v46  ;;  %v1341_v56 = vld [vmem:[#allocation6 + $0x20] sm:$0xff]  ;;  %v1105_v61 = vld [vmem:[#allocation7 + $0x80] sm:$0xff] }
  0x91   : > { %469 = vmatprep.mubr.f32.mxu1 %v4093_v0  ;;  %3569 = vmatprep.subr.bf16.mxu1 %v3568_v21  ;;  %v310_v50 = vmul.f32 %v4416_v47, %v4390_v28  ;;  %v4427_v51 = vpack.c.bf16 %v4416_v47, %v4413_v46  ;;  %v304_v54 = vmul.f32 %v4416_v47, %v4416_v47  ;;  %v565_v58 = vld [vmem:[#allocation7 + $0x70] sm:$0xff]  ;;  %v566_v59 = vld [vmem:[#allocation7 + $0x78] sm:$0xff]  ;;  %v1106_v62 = vld [vmem:[#allocation7 + $0x88] sm:$0xff] }
  0x92   : > { %3063 = vmatmul.mubr.msk.f32.gmra.mrb[2].mxu0 %vm315_vm0, %v314_v22  ;;  %3571 = vmatpush3.bf16.msra.mxu1 %v3568_v21  ;;  %v3596_v60 = vpack.c.bf16 %v566_v59, %v565_v58  ;;  %v4467_v63 = vpack.c.bf16 %v1106_v62, %v1105_v61  ;;  %v1579_v4 = vld [vmem:[#allocation7 + $0x100] sm:$0xff]  ;;  %v1580_v6 = vld [vmem:[#allocation7 + $0x108] sm:$0xff]  ;;  %v1581_v8 = vld [vmem:[#allocation7 + $0x110] sm:$0xff] }
  0x93   : > { %3272 = vmatprep.mubr.msk.f32.mxu0 %vm315_vm0, %v313_v14  ;;  %3573 = vmatprep.subr.bf16.mxu1 %v3572_v23  ;;  %v4429_v52 = vpack.c.bf16 %v310_v50, %v309_v49  ;;  %v4441_v55 = vpack.c.bf16 %v304_v54, %v303_v53  ;;  %v4470_v7 = vpack.c.bf16 %v1580_v6, %v1579_v4  ;;  %v1583_v11 = vld [vmem:[#allocation7 + $0x120] sm:$0xff]  ;;  %v1584_v12 = vld [vmem:[#allocation7 + $0x128] sm:$0xff]  ;;  %v1585_v14 = vld [vmem:[#allocation7 + $0x130] sm:$0xff] }
  0x94   : > { %3065 = vmatmul.mubr.msk.f32.gmra.mrb[2].mxu1 %vm315_vm0, %v314_v22  ;;  %v1587_v17 = vld [vmem:[#allocation7 + $0x140] sm:$0xff]  ;;  %v1588_v18 = vld [vmem:[#allocation7 + $0x148] sm:$0xff]  ;;  %v1589_v20 = vld [vmem:[#allocation7 + $0x150] sm:$0xff] }
  0x95   : > { %v4486_v19 = vpack.c.bf16 %v1588_v18, %v1587_v17  ;;  %v1590_v21 = vld [vmem:[#allocation7 + $0x158] sm:$0xff]  ;;  %v1592_v24 = vld [vmem:[#allocation7 + $0x168] sm:$0xff]  ;;  %v4508_v35 = vld [vmem:[%s4331_s9 + $0x20] sm:$0xff] }
  0x96   : > { %3273 = vmatmul.mubr.msk.f32.vlgmr.msra.gmra.mrb[4].mxu0 %vm315_vm0, %v314_v22  ;;  %3575 = vmatpush3.bf16.msra.mxu1 %v3572_v23  ;;  %v4490_v22 = vpack.c.bf16 %v1590_v21, %v1589_v20  ;;  %v1591_v23 = vld [vmem:[#allocation7 + $0x160] sm:$0xff]  ;;  %v1594_v29 = vld [vmem:[#allocation7 + $0x178] sm:$0xff]  ;;  %v1107_v54 = vld [vmem:[#allocation7 + $0x90] sm:$0xff] }
  0x97   : > { %3603 = vmatpush1.bf16.msra.mxu0 %v3558_v9  ;;  %783 = vmatprep.mubr.f32.mxu0 %v4093_v0  ;;  %v1582_v9 = vld [vmem:[#allocation7 + $0x118] sm:$0xff]  ;;  %v4494_v25 = vpack.c.bf16 %v1592_v24, %v1591_v23  ;;  %v1109_v62 = vld [vmem:[#allocation7 + $0xa0] sm:$0xff]  ;;  %v1110_v4 = vld [vmem:[#allocation7 + $0xa8] sm:$0xff] }
  0x98   : > { %3605 = vmatprep.subr.bf16.mxu0 %v3560_v13  ;;  %3577 = vmatprep.subr.bf16.mxu1 %v3576_v27  ;;  %v4474_v10 = vpack.c.bf16 %v1582_v9, %v1581_v8  ;;  %v4478_v13 = vpack.c.bf16 %v1584_v12, %v1583_v11  ;;  %v3628_v9 = vpack.c.bf16 %v1110_v4, %v1109_v62  ;;  %v1111_v12 = vld [vmem:[#allocation7 + $0xb0] sm:$0xff]  ;;  %v1113_v20 = vld [vmem:[#allocation7 + $0xc0] sm:$0xff]  ;;  %v1114_v21 = vld [vmem:[#allocation7 + $0xc8] sm:$0xff] }
  0x9a   : > { %3068 = vmatmul.mubr.msk.f32.vlgmr.msra.gmra.mrb[6].mxu0 %vm315_vm0, %v711_v31  ;;  %3579 = vmatpush3.bf16.msra.mxu1 %v3576_v27  ;;  %v1593_v27 = vld [vmem:[#allocation7 + $0x170] sm:$0xff] }
  0x9b   : > { %789 = vmatprep.mubr.f32.mxu0 %v4093_v0  ;;  %3607 = vmatpush1.bf16.msra.mxu0 %v3562_v15  ;;  %v1586_v15 = vld [vmem:[#allocation7 + $0x138] sm:$0xff]  ;;  %v4498_v30 = vpack.c.bf16 %v1594_v29, %v1593_v27  ;;  %v1115_v27 = vld [vmem:[#allocation7 + $0xd0] sm:$0xff] }
  0x9c   : > { %3609 = vmatprep.subr.bf16.mxu0 %v4396_v32  ;;  %3581 = vmatprep.subr.bf16.mxu1 %v3580_v33  ;;  %v1116_v29 = vld [vmem:[#allocation7 + $0xd8] sm:$0xff] }
  0x9e   : > { %3069 = vmatmul.mubr.msk.f32.gmra.mrb[8].mxu0 %vm315_vm0, %v712_v36  ;;  %3583 = vmatpush3.bf16.msra.mxu1 %v3580_v33  ;;  %v288_v33 = vld [vmem:[%s4324_s15 + $0x28] sm:$0xff] }
  0x9f   : > { %860 = vmatprep.mubr.f32.mxu0 %v4093_v0  ;;  %3585 = vmatprep.subr.bf16.mxu1 %v3584_v37  ;;  %v300_v41 = vmul.f32 %v288_v33, %v288_v33 }
  0xa2   : > { %3070 = vmatmul.mubr.msk.f32.vlgmr.msra.gmra.mrb[10].mxu0 %vm315_vm0, %v711_v31  ;;  %3587 = vmatpush3.bf16.msra.mxu1 %v3584_v37 }
  0xa3   : > { %866 = vmatprep.mubr.f32.mxu0 %v4093_v0  ;;  %3611 = vmatpush1.bf16.msra.mxu0 %v4375_v16  ;;  %v4482_v16 = vpack.c.bf16 %v1586_v15, %v1585_v14  ;;  %v1112_v14 = vld [vmem:[#allocation7 + $0xb8] sm:$0xff] }
  0xa4   : > { %3613 = vmatprep.subr.bf16.mxu0 %v4407_v42  ;;  %3589 = vmatprep.subr.bf16.mxu1 %v3588_v43  ;;  %v3632_v18 = vpack.c.bf16 %v1112_v14, %v1111_v12 }
  0xa6   : > { %3071 = vmatmul.mubr.msk.f32.gmra.mrb[12].mxu0 %vm315_vm0, %v712_v36  ;;  %3591 = vmatpush3.bf16.msra.mxu1 %v3588_v43 }
  0xa7   : > { %937 = vmatprep.mubr.f32.mxu0 %v4093_v0  ;;  %3593 = vmatprep.subr.bf16.mxu1 %v3592_v48 }
  0xaa   : > { %3072 = vmatmul.mubr.msk.f32.vlgmr.msra.gmra.mrb[14].mxu0 %vm315_vm0, %v711_v31  ;;  %3595 = vmatpush3.bf16.msra.mxu1 %v3592_v48 }
  0xab   : > { %943 = vmatprep.mubr.f32.mxu0 %v4093_v0  ;;  %3615 = vmatpush1.bf16.msra.mxu0 %v4427_v51 }
  0xac   : > { %3617 = vmatprep.subr.bf16.mxu0 %v4429_v52  ;;  %3597 = vmatprep.subr.bf16.mxu1 %v3596_v60 }
  0xae   : > { %3073 = vmatmul.mubr.msk.f32.gmra.mrb[16].mxu0 %vm315_vm0, %v712_v36  ;;  %3599 = vmatpush3.bf16.msra.mxu1 %v3596_v60 }
  0xaf   : > { %1014 = vmatprep.mubr.f32.mxu0 %v4093_v0  ;;  %3621 = vmatprep.subr.bf16.mxu1 %v4467_v63 }
  0xb2   : > { %3074 = vmatmul.mubr.msk.f32.vlgmr.msra.gmra.mrb[18].mxu0 %vm315_vm0, %v711_v31 }
  0xb3   : > { %1020 = vmatprep.mubr.f32.mxu0 %v4093_v0  ;;  %3619 = vmatpush1.bf16.msra.mxu0 %v4441_v55 }
  0xb4   : > { %3653 = vmatprep.subr.bf16.mxu0 %v4427_v51 }
  0xb6   : > { %3075 = vmatmul.mubr.msk.f32.gmra.mrb[20].mxu0 %vm315_vm0, %v712_v36 }
  0xb7   : > { %1091 = vmatprep.mubr.f32.mxu0 %v4093_v0 }
  0xba   : > { %3076 = vmatmul.mubr.msk.f32.vlgmr.msra.gmra.mrb[22].mxu0 %vm315_vm0, %v711_v31  ;;  %v287_v31 = vld [vmem:[%s4324_s15 + $0x20] sm:$0xff] }
  0xbb   : > { %1097 = vmatprep.mubr.f32.mxu0 %v4093_v0  ;;  %3655 = vmatpush1.bf16.msra.mxu0 %v4396_v32  ;;  %v4504_v34 = vpack.c.bf16 %v288_v33, %v287_v31  ;;  %v311_v37 = vmul.f32 %v4508_v35, %v287_v31  ;;  %v299_v40 = vmul.f32 %v287_v31, %v287_v31 }
  0xbc   : > { %3657 = vmatprep.subr.bf16.mxu0 %v4441_v55  ;;  %v2378_v44 = vsub.f32 %v287_v31, %v4508_v35 }
  0xbd   : > { %v4517_v43 = vpack.c.bf16 %v300_v41, %v299_v40  ;;  %v1118_v40 = vld [vmem:[#allocation7 + $0xe8] sm:$0xff] }
  0xbe   : > { %3077 = vmatmul.mubr.msk.f32.gmra.mrb[24].mxu0 %vm315_vm0, %v712_v36  ;;  %v4511_v36 = vld [vmem:[%s4331_s9 + $0x28] sm:$0xff]  ;;  %v4521_v48 = vand.u32 2147483647, %v2378_v44 }
  0xbf   : > { %1413 = vmatprep.mubr.f32.mxu0 %v4093_v0  ;;  %v312_v38 = vmul.f32 %v4511_v36, %v288_v33  ;;  %v2379_v45 = vsub.f32 %v288_v33, %v4511_v36 }
  0xc1   : > { %v4515_v39 = vpack.c.bf16 %v312_v38, %v311_v37  ;;  %v4523_v49 = vand.u32 2147483647, %v2379_v45  ;;  %v3640_v37 = vpack.c.bf16 %v1116_v29, %v1115_v27  ;;  %v1117_v38 = vld [vmem:[#allocation7 + $0xe0] sm:$0xff]  ;;  %v2371_v27 = vsub.f32 %v4359_v5, %v4351_v2  ;;  %v2137_v29 = vld [vmem:[#allocation7 + $0x190] sm:$0xff] }
  0xc2   : > { %3078 = vmatmul.mubr.msk.f32.vlgmr.msra.gmra.mrb[26].mxu0 %vm315_vm0, %v1341_v56  ;;  %v3644_v45 = vpack.c.bf16 %v1118_v40, %v1117_v38  ;;  %v2374_v5 = vsub.f32 %v4387_v26, %v4413_v46  ;;  %v2139_v40 = vld [vmem:[#allocation7 + $0x1a0] sm:$0xff] }
  0xc3   : > { %1419 = vmatprep.mubr.f32.mxu0 %v4093_v0  ;;  %3659 = vmatpush1.bf16.msra.mxu0 %v4407_v42  ;;  %v3760_v50 = vpack.c.bf16 %v4523_v49, %v4521_v48  ;;  %v2703_v49 = vld [vmem:[#allocation7 + $0x218] sm:$0xff] }
  0xc4   : > { %3661 = vmatprep.subr.bf16.mxu0 %v4429_v52 }
  0xc6   : > { %3079 = vmatmul.mubr.msk.f32.gmra.mrb[28].mxu0 %vm315_vm0, %v1342_v57 }
  0xc7   : > { %1490 = vmatprep.mubr.f32.mxu0 %v4093_v0 }
  0xca   : > { %3080 = vmatmul.mubr.msk.f32.vlgmr.msra.gmra.mrb[30].mxu0 %vm315_vm0, %v1341_v56 }
  0xcb   : > { %1496 = vmatprep.mubr.f32.mxu0 %v4093_v0  ;;  %3663 = vmatpush3.bf16.msra.mxu0 %v4429_v52 }
  0xcc   : > { %3665 = vmatprep.subr.bf16.mxu0 %v4470_v7 }
  0xce   : > { %3081 = vmatmul.mubr.msk.f32.gmra.mrb[32].mxu0 %vm315_vm0, %v1342_v57 }
  0xcf   : > { %3388 = vmatprep.mubr.msk.f32.mxu0 %vm315_vm0, %v1341_v56  ;;  %v1108_v56 = vld [vmem:[#allocation7 + $0x98] sm:$0xff] }
  0xd0   : > { %v3624_v59 = vpack.c.bf16 %v1108_v56, %v1107_v54  ;;  %v1120_v54 = vld [vmem:[#allocation7 + $0xf8] sm:$0xff] }
  0xd2   : > { %3389 = vmatmul.mubr.msk.f32.vlgmr.msra.gmra.mrb[34].mxu0 %vm315_vm0, %v1342_v57 }
  0xd3   : > { %3667 = vmatpush3.bf16.msra.mxu0 %v4470_v7 }
  0xd4   : > { %3669 = vmatprep.subr.bf16.mxu0 %v4474_v10 }
  0xd7   : > { %3671 = vmatpush3.bf16.msra.mxu0 %v4474_v10 }
  0xd8   : > { %3673 = vmatprep.subr.bf16.mxu0 %v4478_v13 }
  0xdb   : > { %3675 = vmatpush3.bf16.msra.mxu0 %v4478_v13 }
  0xdc   : > { %3677 = vmatprep.subr.bf16.mxu0 %v4482_v16 }
  0xdf   : > { %3679 = vmatpush3.bf16.msra.mxu0 %v4482_v16 }
  0xe0   : > { %3681 = vmatprep.subr.bf16.mxu0 %v4486_v19 }
  0xe3   : > { %3683 = vmatpush3.bf16.msra.mxu0 %v4486_v19 }
  0xe4   : > { %3685 = vmatprep.subr.bf16.mxu0 %v4490_v22 }
  0xe7   : > { %3687 = vmatpush3.bf16.msra.mxu0 %v4490_v22 }
  0xe8   : > { %3689 = vmatprep.subr.bf16.mxu0 %v4494_v25 }
  0xeb   : > { %3691 = vmatpush3.bf16.msra.mxu0 %v4494_v25 }
  0xec   : > { %3693 = vmatprep.subr.bf16.mxu0 %v4498_v30 }
  0xef   : > { %3695 = vmatpush3.bf16.msra.mxu0 %v4498_v30 }
  0xf0   : > { %3705 = vmatprep.subr.bf16.mxu0 %v4504_v34 }
 0x161   : > { %v388_v53 = vpop.f32.mrb[0].mxu0 }
 0x162   : > { %v390_v57 = vpop.f32.mrb[1].mxu0  ;;  %3307 = vmatprep.mubr.f32.mxu1 %v388_v53  ;;  %v1119_v53 = vld [vmem:[#allocation7 + $0xf0] sm:$0xff] }
 0x163   : > { %v465_v58 = vpop.f32.mrb[0].mxu1 }
 0x164   : > { %v467_v60 = vpop.f32.mrb[1].mxu1 }
 0x165   : > { %v394_v61 = vpop.f32.mrb[2].mxu0 }
 0x166   : > { %v396_v6 = vpop.f32.mrb[3].mxu0  ;;  %3308 = vmatmul.mubr.f32.vlgmr.msra.gmra.mrb[4].mxu1 %v394_v61 }
 0x167   : > { %3623 = vmatpush3.bf16.msra.mxu1 %v4467_v63  ;;  %3310 = vmatprep.mubr.f32.mxu1 %v390_v57  ;;  %v471_v8 = vpop.f32.mrb[2].mxu1  ;;  %v3636_v63 = vpack.c.bf16 %v1114_v21, %v1113_v20 }
 0x168   : > { %3625 = vmatprep.subr.bf16.mxu1 %v3624_v59  ;;  %v473_v11 = vpop.f32.mrb[3].mxu1 }
 0x169   : > { %v3274_v15 = vpop.f32.mrb[4].mxu0 }
 0x16a   : > { %3311 = vmatmul.mubr.f32.gmra.mrb[6].mxu1 %v396_v6  ;;  %v542_v17 = vpop.f32.mrb[5].mxu0 }
 0x16b   : > { %3627 = vmatpush3.bf16.msra.mxu1 %v3624_v59  ;;  %3313 = vmatprep.mubr.f32.mxu1 %v465_v58  ;;  %v3648_v58 = vpack.c.bf16 %v1120_v54, %v1119_v53  ;;  %v2707_v53 = vld [vmem:[#allocation7 + $0x238] sm:$0xff] }
 0x16c   : > { %3629 = vmatprep.subr.bf16.mxu1 %v3628_v9 }
 0x16d   : > { %v785_v23 = vpop.f32.mrb[6].mxu0 }
 0x16e   : > { %3314 = vmatmul.mubr.f32.gmra.mrb[8].mxu1 %v471_v8  ;;  %v787_v24 = vpop.f32.mrb[7].mxu0 }
 0x16f   : > { %3631 = vmatpush3.bf16.msra.mxu1 %v3628_v9  ;;  %3316 = vmatprep.mubr.f32.mxu1 %v467_v60 }
 0x170   : > { %3633 = vmatprep.subr.bf16.mxu1 %v3632_v18 }
 0x171   : > { %v791_v31 = vpop.f32.mrb[8].mxu0 }
 0x172   : > { %3317 = vmatmul.mubr.f32.gmra.mrb[10].mxu1 %v473_v11  ;;  %v793_v33 = vpop.f32.mrb[9].mxu0 }
 0x173   : > { %3635 = vmatpush3.bf16.msra.mxu1 %v3632_v18  ;;  %3319 = vmatprep.mubr.f32.mxu1 %v542_v17  ;;  %v305_v17 = vmul.f32 %v4508_v35, %v4508_v35  ;;  %v306_v18 = vmul.f32 %v4511_v36, %v4511_v36 }
 0x174   : > { %3637 = vmatprep.subr.bf16.mxu1 %v3636_v63 }
 0x175   : > { %v862_v41 = vpop.f32.mrb[10].mxu0  ;;  %v3714_v21 = vpack.c.bf16 %v306_v18, %v305_v17  ;;  %v2147_v17 = vld [vmem:[#allocation7 + $0x1e0] sm:$0xff]  ;;  %v2148_v18 = vld [vmem:[#allocation7 + $0x1e8] sm:$0xff] }
 0x176   : > { %3320 = vmatmul.mubr.f32.gmra.mrb[12].mxu1 %v3274_v15  ;;  %v864_v44 = vpop.f32.mrb[11].mxu0 }
 0x177   : > { %3639 = vmatpush3.bf16.msra.mxu1 %v3636_v63  ;;  %3354 = vmatprep.mubr.f32.mxu1 %v785_v23 }
 0x178   : > { %3641 = vmatprep.subr.bf16.mxu1 %v3640_v37 }
 0x179   : > { %v868_v56 = vpop.f32.mrb[12].mxu0 }
 0x17a   : > { %v870_v57 = vpop.f32.mrb[13].mxu0 }
 0x17b   : > { %3643 = vmatpush3.bf16.msra.mxu1 %v3640_v37  ;;  %v2705_v37 = vld [vmem:[#allocation7 + $0x228] sm:$0xff] }
 0x17c   : > { %3645 = vmatprep.subr.bf16.mxu1 %v3644_v45 }
 0x17d   : > { %v939_v59 = vpop.f32.mrb[14].mxu0 }
 0x17e   : > { %v941_v60 = vpop.f32.mrb[15].mxu0 }
 0x17f   : > { %3647 = vmatpush3.bf16.msra.mxu1 %v3644_v45 }
 0x180   : > { %3649 = vmatprep.subr.bf16.mxu1 %v3648_v58 }
 0x181   : > { %v945_v61 = vpop.f32.mrb[16].mxu0 }
 0x182   : > { %v947_v62 = vpop.f32.mrb[17].mxu0 }
 0x183   : > { %3651 = vmatpush3.bf16.msra.mxu1 %v3648_v58  ;;  %v2708_v58 = vld [vmem:[#allocation7 + $0x240] sm:$0xff] }
 0x184   : > { %3796 = vmatprep.subr.bf16.mxu1 %v4470_v7 }
 0x185   : > { %v1016_v4 = vpop.f32.mrb[18].mxu0 }
 0x186   : > { %3355 = vmatmul.mubr.f32.vlgmr.msra.gmra.mrb[14].mxu1 %v791_v31  ;;  %v1018_v6 = vpop.f32.mrb[19].mxu0  ;;  %v2138_v31 = vld [vmem:[#allocation7 + $0x198] sm:$0xff] }
 0x187   : > { %3357 = vmatprep.mubr.f32.mxu1 %v787_v24  ;;  %3804 = vmatpush3.bf16.msra.mxu1 %v4470_v7  ;;  %v4552_v24 = vpack.c.bf16 %v4511_v36, %v4508_v35  ;;  %v2370_v36 = vsub.f32 %v4354_v3, %v4348_v1  ;;  %v2383_v1 = vld [vmem:[#allocation6 + $0x40] sm:$0xff]  ;;  %v2384_v3 = vld [vmem:[#allocation6 + $0x48] sm:$0xff] }
 0x188   : > { %3797 = vmatprep.subr.bf16.mxu1 %v4474_v10 }
 0x189   : > { %v1022_v8 = vpop.f32.mrb[20].mxu0 }
 0x18a   : > { %3358 = vmatmul.mubr.f32.gmra.mrb[16].mxu1 %v793_v33  ;;  %v1024_v9 = vpop.f32.mrb[21].mxu0  ;;  %v3720_v33 = vpack.c.bf16 %v2138_v31, %v2137_v29 }
 0x18b   : > { %3360 = vmatprep.mubr.f32.mxu1 %v862_v41  ;;  %3805 = vmatpush3.bf16.msra.mxu1 %v4474_v10  ;;  %v2140_v41 = vld [vmem:[#allocation7 + $0x1a8] sm:$0xff] }
 0x18c   : > { %3798 = vmatprep.subr.bf16.mxu1 %v4478_v13  ;;  %v3724_v45 = vpack.c.bf16 %v2140_v41, %v2139_v40 }
 0x18d   : > { %v1093_v11 = vpop.f32.mrb[22].mxu0 }
 0x18e   : > { %3361 = vmatmul.mubr.f32.gmra.mrb[18].mxu1 %v868_v56  ;;  %v1095_v12 = vpop.f32.mrb[23].mxu0  ;;  %v2141_v56 = vld [vmem:[#allocation7 + $0x1b0] sm:$0xff] }
 0x18f   : > { %3363 = vmatprep.mubr.f32.mxu1 %v864_v44  ;;  %3806 = vmatpush3.bf16.msra.mxu1 %v4478_v13  ;;  %v2706_v44 = vld [vmem:[#allocation7 + $0x230] sm:$0xff] }
 0x190   : > { %3799 = vmatprep.subr.bf16.mxu1 %v4482_v16  ;;  %v3776_v54 = vpack.c.bf16 %v2707_v53, %v2706_v44 }
 0x191   : > { %v1099_v14 = vpop.f32.mrb[24].mxu0 }
 0x192   : > { %3364 = vmatmul.mubr.f32.gmra.mrb[20].mxu1 %v870_v57  ;;  %v1101_v7 = vpop.f32.mrb[25].mxu0  ;;  %v2142_v57 = vld [vmem:[#allocation7 + $0x1b8] sm:$0xff] }
 0x193   : > { %3366 = vmatprep.mubr.f32.mxu1 %v939_v59  ;;  %3807 = vmatpush3.bf16.msra.mxu1 %v4482_v16  ;;  %v3728_v59 = vpack.c.bf16 %v2142_v57, %v2141_v56 }
 0x194   : > { %3800 = vmatprep.subr.bf16.mxu1 %v4486_v19 }
 0x195   : > { %v1415_v15 = vpop.f32.mrb[26].mxu0 }
 0x196   : > { %3367 = vmatmul.mubr.f32.gmra.mrb[22].mxu1 %v945_v61  ;;  %v1417_v10 = vpop.f32.mrb[27].mxu0  ;;  %3423 = vmatprep.mubr.f32.mxu0 %v1415_v15 }
 0x197   : > { %3369 = vmatprep.mubr.f32.mxu1 %v941_v60  ;;  %3808 = vmatpush3.bf16.msra.mxu1 %v4486_v19  ;;  %v4547_v19 = vld [vmem:[#allocation6 + $0x30] sm:$0xff]  ;;  %v2709_v60 = vld [vmem:[#allocation7 + $0x248] sm:$0xff] }
 0x198   : > { %3801 = vmatprep.subr.bf16.mxu1 %v4490_v22  ;;  %v3780_v61 = vpack.c.bf16 %v2709_v60, %v2708_v58 }
 0x199   : > { %v1421_v13 = vpop.f32.mrb[28].mxu0 }
 0x19a   : > { %3370 = vmatmul.mubr.f32.gmra.mrb[24].mxu1 %v947_v62  ;;  %3424 = vmatmul.mubr.f32.vlgmr.msra.gmra.mrb[36].mxu0 %v1421_v13  ;;  %v1423_v16 = vpop.f32.mrb[29].mxu0  ;;  %v2143_v62 = vld [vmem:[#allocation7 + $0x1c0] sm:$0xff] }
 0x19b   : > { %3372 = vmatprep.mubr.f32.mxu1 %v1016_v4  ;;  %3809 = vmatpush3.bf16.msra.mxu1 %v4490_v22  ;;  %v2144_v4 = vld [vmem:[#allocation7 + $0x1c8] sm:$0xff] }
 0x19c   : > { %3802 = vmatprep.subr.bf16.mxu1 %v4494_v25  ;;  %3707 = vmatpush1.bf16.msra.mxu0 %v4429_v52  ;;  %v4559_v52 = vld [vmem:[#allocation6 + $0x38] sm:$0xff] }
 0x19d   : > { %1967 = vmatprep.mubr.f32.mxu0 %v4093_v0  ;;  %v1492_v20 = vpop.f32.mrb[30].mxu0  ;;  %3713 = vmatprep.subr.bf16.mxu0 %v4515_v39 }
 0x19e   : > { %3373 = vmatmul.mubr.f32.gmra.mrb[26].mxu1 %v1022_v8  ;;  %v1494_v23 = vpop.f32.mrb[31].mxu0  ;;  %v3732_v8 = vpack.c.bf16 %v2144_v4, %v2143_v62 }
 0x19f   : > { %3375 = vmatprep.mubr.f32.mxu1 %v1018_v6  ;;  %3810 = vmatpush3.bf16.msra.mxu1 %v4494_v25  ;;  %v2710_v6 = vld [vmem:[#allocation7 + $0x250] sm:$0xff] }
 0x1a0   : > { %3803 = vmatprep.subr.bf16.mxu1 %v4498_v30  ;;  %3088 = vmatmul.mubr.msk.f32.vlgmr.msra.gmra.mrb[38].mxu0 %vm315_vm0, %v4547_v19 }
 0x1a1   : > { %1973 = vmatprep.mubr.f32.mxu0 %v4093_v0  ;;  %3715 = vmatpush1.bf16.msra.mxu0 %v3714_v21  ;;  %v1498_v22 = vpop.f32.mrb[32].mxu0 }
 0x1a2   : > { %3376 = vmatmul.mubr.f32.gmra.mrb[28].mxu1 %v1024_v9  ;;  %v1500_v63 = vpop.f32.mrb[33].mxu0  ;;  %3749 = vmatprep.subr.bf16.mxu0 %v4552_v24  ;;  %v2711_v9 = vld [vmem:[#allocation7 + $0x258] sm:$0xff] }
 0x1a3   : > { %3378 = vmatprep.mubr.f32.mxu1 %v1093_v11  ;;  %3811 = vmatpush3.bf16.msra.mxu1 %v4498_v30  ;;  %v2373_v30 = vand.u32 2147483647, %v2371_v27  ;;  %v3784_v11 = vpack.c.bf16 %v2711_v9, %v2710_v6 }
 0x1a4   : > { %3697 = vmatprep.subr.bf16.mxu1 %v4427_v51  ;;  %3089 = vmatmul.mubr.msk.f32.gmra.mrb[40].mxu0 %vm315_vm0, %v4559_v52  ;;  %v2372_v51 = vand.u32 2147483647, %v2370_v36 }
 0x1a5   : > { %2121 = vmatprep.mubr.f32.mxu0 %v4093_v0  ;;  %v3390_v25 = vpop.f32.mrb[34].mxu0 }
 0x1a6   : > { %3379 = vmatmul.mubr.f32.gmra.mrb[30].mxu1 %v1099_v14  ;;  %v1569_v35 = vpop.f32.mrb[35].mxu0  ;;  %v3756_v2 = vpack.c.bf16 %v2373_v30, %v2372_v51  ;;  %v2146_v14 = vld [vmem:[#allocation7 + $0x1d8] sm:$0xff] }
 0x1a7   : > { %3381 = vmatprep.mubr.f32.mxu1 %v1095_v12  ;;  %v2145_v12 = vld [vmem:[#allocation7 + $0x1d0] sm:$0xff] }
 0x1a8   : > { %3092 = vmatmul.mubr.msk.f32.vlgmr.msra.gmra.mrb[42].mxu0 %vm315_vm0, %v4547_v19  ;;  %v3736_v15 = vpack.c.bf16 %v2146_v14, %v2145_v12 }
 0x1a9   : > { %2127 = vmatprep.mubr.f32.mxu0 %v4093_v0  ;;  %3751 = vmatpush1.bf16.msra.mxu0 %v4504_v34 }
 0x1aa   : > { %3382 = vmatmul.mubr.f32.gmra.mrb[32].mxu1 %v1101_v7  ;;  %3753 = vmatprep.subr.bf16.mxu0 %v3714_v21  ;;  %v2712_v7 = vld [vmem:[#allocation7 + $0x260] sm:$0xff] }
 0x1ab   : > { %3426 = vmatprep.mubr.f32.mxu1 %v1417_v10  ;;  %v2713_v10 = vld [vmem:[#allocation7 + $0x268] sm:$0xff] }
 0x1ac   : > { %3093 = vmatmul.mubr.msk.f32.gmra.mrb[44].mxu0 %vm315_vm0, %v4559_v52  ;;  %v3788_v13 = vpack.c.bf16 %v2713_v10, %v2712_v7 }
 0x1ad   : > { %2455 = vmatprep.mubr.f32.mxu0 %v4093_v0 }
 0x1ae   : > { %3427 = vmatmul.mubr.f32.vlgmr.msra.gmra.mrb[34].mxu1 %v1423_v16  ;;  %v2714_v16 = vld [vmem:[#allocation7 + $0x270] sm:$0xff] }
 0x1af   : > { %3429 = vmatprep.mubr.f32.mxu1 %v1492_v20  ;;  %3699 = vmatpush1.bf16.msra.mxu1 %v4396_v32  ;;  %v2375_v32 = vsub.f32 %v4390_v28, %v4416_v47  ;;  %v2700_v28 = vld [vmem:[#allocation7 + $0x200] sm:$0xff]  ;;  %v2715_v20 = vld [vmem:[#allocation7 + $0x278] sm:$0xff] }
 0x1b0   : > { %3094 = vmatmul.mubr.msk.f32.vlgmr.msra.gmra.mrb[46].mxu0 %vm315_vm0, %v2383_v1  ;;  %3701 = vmatprep.subr.bf16.mxu1 %v4441_v55  ;;  %v2376_v55 = vand.u32 2147483647, %v2374_v5  ;;  %v2135_v47 = vld [vmem:[#allocation7 + $0x180] sm:$0xff]  ;;  %v3792_v21 = vpack.c.bf16 %v2715_v20, %v2714_v16 }
 0x1b1   : > { %2461 = vmatprep.mubr.f32.mxu0 %v4093_v0  ;;  %3755 = vmatpush1.bf16.msra.mxu0 %v4517_v43  ;;  %v2377_v34 = vand.u32 2147483647, %v2375_v32 }
 0x1b2   : > { %3430 = vmatmul.mubr.f32.gmra.mrb[36].mxu1 %v1498_v22  ;;  %3757 = vmatprep.subr.bf16.mxu0 %v3756_v2 }
 0x1b3   : > { %3432 = vmatprep.mubr.f32.mxu1 %v1494_v23  ;;  %v3762_v26 = vpack.c.bf16 %v2377_v34, %v2376_v55  ;;  %v2149_v23 = vld [vmem:[#allocation7 + $0x1f0] sm:$0xff] }
 0x1b4   : > { %3095 = vmatmul.mubr.msk.f32.gmra.mrb[48].mxu0 %vm315_vm0, %v2384_v3 }
 0x1b5   : > { %2532 = vmatprep.mubr.f32.mxu0 %v4093_v0 }
 0x1b6   : > { %3433 = vmatmul.mubr.f32.gmra.mrb[38].mxu1 %v1500_v63 }
 0x1b7   : > { %3435 = vmatprep.mubr.f32.mxu1 %v1569_v35 }
 0x1b8   : > { %3096 = vmatmul.mubr.msk.f32.vlgmr.msra.gmra.mrb[50].mxu0 %vm315_vm0, %v2383_v1 }
 0x1b9   : > { %2538 = vmatprep.mubr.f32.mxu0 %v4093_v0  ;;  %3759 = vmatpush1.bf16.msra.mxu0 %v4515_v39  ;;  %v2136_v39 = vld [vmem:[#allocation7 + $0x188] sm:$0xff] }
 0x1ba   : > { %3436 = vmatmul.mubr.f32.gmra.mrb[40].mxu1 %v3390_v25  ;;  %3761 = vmatprep.subr.bf16.mxu0 %v3760_v50  ;;  %v3716_v48 = vpack.c.bf16 %v2136_v39, %v2135_v47 }
 0x1bb   : > { %1813 = vmatprep.mubr.f32.mxu1 %v4093_v0 }
 0x1bc   : > { %3097 = vmatmul.mubr.msk.f32.gmra.mrb[52].mxu0 %vm315_vm0, %v2384_v3 }
 0x1bd   : > { %2609 = vmatprep.mubr.f32.mxu0 %v4093_v0 }
 0x1be   : > { %3084 = vmatmul.mubr.msk.f32.vlgmr.msra.gmra.mrb[42].mxu1 %vm315_vm0, %v4547_v19 }
 0x1bf   : > { %3703 = vmatpush1.bf16.msra.mxu1 %v4407_v42  ;;  %1819 = vmatprep.mubr.f32.mxu1 %v4093_v0  ;;  %v2701_v42 = vld [vmem:[#allocation7 + $0x208] sm:$0xff] }
 0x1c0   : > { %3709 = vmatprep.subr.bf16.mxu1 %v4517_v43  ;;  %3098 = vmatmul.mubr.msk.f32.vlgmr.msra.gmra.mrb[54].mxu0 %vm315_vm0, %v2383_v1  ;;  %v3764_v46 = vpack.c.bf16 %v2701_v42, %v2700_v28  ;;  %v2702_v43 = vld [vmem:[#allocation7 + $0x210] sm:$0xff] }
 0x1c1   : > { %2615 = vmatprep.mubr.f32.mxu0 %v4093_v0  ;;  %3763 = vmatpush1.bf16.msra.mxu0 %v3762_v26  ;;  %v3768_v50 = vpack.c.bf16 %v2703_v49, %v2702_v43 }
 0x1c2   : > { %3085 = vmatmul.mubr.msk.f32.gmra.mrb[44].mxu1 %vm315_vm0, %v4559_v52  ;;  %3765 = vmatprep.subr.bf16.mxu0 %v3764_v46 }
 0x1c3   : > { %1890 = vmatprep.mubr.f32.mxu1 %v4093_v0 }
 0x1c4   : > { %3099 = vmatmul.mubr.msk.f32.gmra.mrb[56].mxu0 %vm315_vm0, %v2384_v3 }
 0x1c5   : > { %2686 = vmatprep.mubr.f32.mxu0 %v4093_v0 }
 0x1c6   : > { %3086 = vmatmul.mubr.msk.f32.vlgmr.msra.gmra.mrb[46].mxu1 %vm315_vm0, %v4547_v19 }
 0x1c7   : > { %1896 = vmatprep.mubr.f32.mxu1 %v4093_v0  ;;  %3711 = vmatpush1.bf16.msra.mxu1 %v4552_v24  ;;  %v2150_v24 = vld [vmem:[#allocation7 + $0x1f8] sm:$0xff] }
 0x1c8   : > { %3100 = vmatmul.mubr.msk.f32.vlgmr.msra.gmra.mrb[58].mxu0 %vm315_vm0, %v2383_v1  ;;  %3717 = vmatprep.subr.bf16.mxu1 %v3716_v48 }
 0x1c9   : > { %2692 = vmatprep.mubr.f32.mxu0 %v4093_v0  ;;  %3767 = vmatpush3.bf16.msra.mxu0 %v3764_v46 }
 0x1ca   : > { %3087 = vmatmul.mubr.msk.f32.gmra.mrb[48].mxu1 %vm315_vm0, %v4559_v52  ;;  %3769 = vmatprep.subr.bf16.mxu0 %v3768_v50 }
 0x1cb   : > { %2044 = vmatprep.mubr.f32.mxu1 %v4093_v0 }
 0x1cc   : > { %3101 = vmatmul.mubr.msk.f32.gmra.mrb[60].mxu0 %vm315_vm0, %v2384_v3 }
 0x1cd   : > { %3771 = vmatpush3.bf16.msra.mxu0 %v3768_v50 }
 0x1ce   : > { %3090 = vmatmul.mubr.msk.f32.vlgmr.msra.gmra.mrb[50].mxu1 %vm315_vm0, %v4547_v19  ;;  %v3740_v19 = vpack.c.bf16 %v2148_v18, %v2147_v17 }
 0x1cf   : > { %2050 = vmatprep.mubr.f32.mxu1 %v4093_v0  ;;  %3719 = vmatpush3.bf16.msra.mxu1 %v3716_v48  ;;  %v2704_v0 = vld [vmem:[#allocation7 + $0x220] sm:$0xff] }
 0x1d0   : > { %v3772_v38 = vpack.c.bf16 %v2705_v37, %v2704_v0  ;;  %3721 = vmatprep.subr.bf16.mxu1 %v3720_v33 }
 0x1d2   : > { %3091 = vmatmul.mubr.msk.f32.gmra.mrb[52].mxu1 %vm315_vm0, %v4559_v52  ;;  %3773 = vmatprep.subr.bf16.mxu0 %v3772_v38  ;;  %v3744_v52 = vpack.c.bf16 %v2150_v24, %v2149_v23 }
 0x1d3   : > { %3723 = vmatpush3.bf16.msra.mxu1 %v3720_v33  ;;  %3775 = vmatpush3.bf16.msra.mxu0 %v3772_v38 }
 0x1d4   : > { %3725 = vmatprep.subr.bf16.mxu1 %v3724_v45  ;;  %3777 = vmatprep.subr.bf16.mxu0 %v3776_v54 }
 0x1d7   : > { %3727 = vmatpush3.bf16.msra.mxu1 %v3724_v45  ;;  %3779 = vmatpush3.bf16.msra.mxu0 %v3776_v54 }
 0x1d8   : > { %3729 = vmatprep.subr.bf16.mxu1 %v3728_v59  ;;  %3781 = vmatprep.subr.bf16.mxu0 %v3780_v61 }
 0x1db   : > { %3731 = vmatpush3.bf16.msra.mxu1 %v3728_v59  ;;  %3783 = vmatpush3.bf16.msra.mxu0 %v3780_v61 }
 0x1dc   : > { %3733 = vmatprep.subr.bf16.mxu1 %v3732_v8  ;;  %3785 = vmatprep.subr.bf16.mxu0 %v3784_v11 }
 0x1df   : > { %3735 = vmatpush3.bf16.msra.mxu1 %v3732_v8  ;;  %3787 = vmatpush3.bf16.msra.mxu0 %v3784_v11 }
 0x1e0   : > { %3737 = vmatprep.subr.bf16.mxu1 %v3736_v15  ;;  %3789 = vmatprep.subr.bf16.mxu0 %v3788_v13 }
 0x1e3   : > { %3739 = vmatpush3.bf16.msra.mxu1 %v3736_v15  ;;  %3791 = vmatpush3.bf16.msra.mxu0 %v3788_v13 }
 0x1e4   : > { %3741 = vmatprep.subr.bf16.mxu1 %v3740_v19  ;;  %3793 = vmatprep.subr.bf16.mxu0 %v3792_v21 }
 0x1e7   : > { %3743 = vmatpush3.bf16.msra.mxu1 %v3740_v19  ;;  %3795 = vmatpush3.bf16.msra.mxu0 %v3792_v21 }
 0x1e8   : > { %3745 = vmatprep.subr.bf16.mxu1 %v3744_v52 }
 0x1eb   : > { %3747 = vmatpush3.bf16.msra.mxu1 %v3744_v52 }
 0x239   : > { %v3309_v22 = vpop.f32.mrb[4].mxu1 }
 0x23a   : > { %v633_v63 = vpop.f32.mrb[5].mxu1  ;;  %v683_v51 = vmul.f32 %v3309_v22, %v3309_v22 }
 0x23b   : > { %v682_v30 = vmul.f32 %v633_v63, %v633_v63 }
 0x23d   : > { %v3312_v25 = vpop.f32.mrb[6].mxu1 }
 0x23e   : > { %v687_v35 = vmul.f32 %v3312_v25, %v3309_v22  ;;  %v643_v36 = vpop.f32.mrb[7].mxu1  ;;  %v685_v32 = vmul.f32 %v3312_v25, %v3312_v25 }
 0x23f   : > { %v686_v27 = vmul.f32 %v643_v36, %v633_v63  ;;  %v684_v55 = vmul.f32 %v643_v36, %v643_v36 }
 0x241   : > { %v3315_v1 = vpop.f32.mrb[8].mxu1 }
 0x242   : > { %v689_v2 = vsub.f32 %v3315_v1, %v683_v51  ;;  %v653_v3 = vpop.f32.mrb[9].mxu1 }
 0x243   : > { %v688_v5 = vsub.f32 %v653_v3, %v682_v30 }
 0x245   : > { %v3318_v34 = vpop.f32.mrb[10].mxu1 }
 0x246   : > { %v691_v26 = vsub.f32 %v3318_v34, %v685_v32  ;;  %v663_v28 = vpop.f32.mrb[11].mxu1 }
 0x247   : > { %v690_v42 = vsub.f32 %v663_v28, %v684_v55 }
 0x248   : > { %v699_v46 = vadd.f32 %v691_v26, %v689_v2 }
 0x249   : > { %v698_v47 = vadd.f32 %v690_v42, %v688_v5  ;;  %v3321_v39 = vpop.f32.mrb[12].mxu1 }
 0x24a   : > { %v701_v43 = vadd.f32 0.0009, %v699_v46  ;;  %v693_v48 = vsub.f32 %v3321_v39, %v687_v35  ;;  %v673_v49 = vpop.f32.mrb[13].mxu1 }
 0x24b   : > { %v700_v50 = vadd.f32 0.0009, %v698_v47  ;;  %v692_v29 = vsub.f32 %v673_v49, %v686_v27 }
 0x24c   : > { %3891 = vrcp.f32 %v701_v43  ;;  %v695_v31 = vmul.f32 2.0, %v693_v48 }
 0x24d   : > { %3893 = vrcp.f32 %v700_v50  ;;  %v694_v0 = vmul.f32 2.0, %v692_v29 }
 0x24e   : > { %v697_v33 = vadd.f32 0.0009, %v695_v31 }
 0x24f   : > { %v696_v38 = vadd.f32 0.0009, %v694_v0 }
 0x256   : > { %v3892_v37 = vpop.eup %3891 }
 0x257   : > { %v3894_v40 = vpop.eup %3893  ;;  %v705_v41 = vmul.f32 %v3892_v37, %v697_v33 }
 0x258   : > { %v704_v44 = vmul.f32 %v3894_v40, %v696_v38 }
 0x259   : > { %v3356_v45 = vpop.f32.mrb[14].mxu1  ;;  %v707_v2 = vmul.f32 %v705_v41, %v705_v41 }
 0x25a   : > { %v1187_v53 = vpop.f32.mrb[15].mxu1  ;;  %v1287_v59 = vmul.f32 %v3356_v45, %v3356_v45  ;;  %v706_v34 = vmul.f32 %v704_v44, %v704_v44 }
 0x25b   : > { %v1286_v60 = vmul.f32 %v1187_v53, %v1187_v53  ;;  %v709_v29 = vmul.f32 %v707_v2, %v705_v41 }
 0x25c   : > { %v708_v37 = vmul.f32 %v706_v34, %v704_v44 }
 0x25d   : > { %v3359_v54 = vpop.f32.mrb[16].mxu1 }
 0x25e   : > { %v1291_v56 = vmul.f32 %v3359_v54, %v3356_v45  ;;  %v1197_v57 = vpop.f32.mrb[17].mxu1  ;;  %v1289_v8 = vmul.f32 %v3359_v54, %v3359_v54 }
 0x25f   : > { %v1290_v58 = vmul.f32 %v1197_v57, %v1187_v53  ;;  %v1288_v9 = vmul.f32 %v1197_v57, %v1197_v57 }
 0x261   : > { %v3362_v61 = vpop.f32.mrb[18].mxu1 }
 0x262   : > { %v1293_v62 = vsub.f32 %v3362_v61, %v1287_v59  ;;  %v1207_v4 = vpop.f32.mrb[19].mxu1 }
 0x263   : > { %v1292_v6 = vsub.f32 %v1207_v4, %v1286_v60 }
 0x265   : > { %v3365_v11 = vpop.f32.mrb[20].mxu1 }
 0x266   : > { %v1295_v12 = vsub.f32 %v3365_v11, %v1289_v8  ;;  %v1217_v14 = vpop.f32.mrb[21].mxu1 }
 0x267   : > { %v1294_v7 = vsub.f32 %v1217_v14, %v1288_v9 }
 0x268   : > { %v1303_v15 = vadd.f32 %v1295_v12, %v1293_v62 }
 0x269   : > { %v1302_v10 = vadd.f32 %v1294_v7, %v1292_v6  ;;  %v3368_v13 = vpop.f32.mrb[22].mxu1 }
 0x26a   : > { %v1305_v17 = vadd.f32 0.0009, %v1303_v15  ;;  %v1297_v18 = vsub.f32 %v3368_v13, %v1291_v56  ;;  %v1227_v16 = vpop.f32.mrb[23].mxu1 }
 0x26b   : > { %v1304_v19 = vadd.f32 0.0009, %v1302_v10  ;;  %v1296_v20 = vsub.f32 %v1227_v16, %v1290_v58 }
 0x26c   : > { %3895 = vrcp.f32 %v1305_v17  ;;  %v1299_v22 = vmul.f32 2.0, %v1297_v18 }
 0x26d   : > { %3897 = vrcp.f32 %v1304_v19  ;;  %v3371_v21 = vpop.f32.mrb[24].mxu1  ;;  %v3425_v23 = vpop.f32.mrb[36].mxu0  ;;  %v1298_v25 = vmul.f32 2.0, %v1296_v20 }
 0x26e   : > { %v1237_v24 = vpop.f32.mrb[25].mxu1  ;;  %v1661_v52 = vpop.f32.mrb[37].mxu0  ;;  %v1315_v30 = vmul.f32 %v3371_v21, %v3371_v21  ;;  %v1301_v3 = vadd.f32 0.0009, %v1299_v22  ;;  %v1711_v10 = vmul.f32 %v3425_v23, %v3425_v23 }
 0x26f   : > { %v1314_v5 = vmul.f32 %v1237_v24, %v1237_v24  ;;  %v1300_v26 = vadd.f32 0.0009, %v1298_v25  ;;  %v1710_v18 = vmul.f32 %v1661_v52, %v1661_v52 }
 0x271   : > { %v3374_v63 = vpop.f32.mrb[26].mxu1 }
 0x272   : > { %v1319_v35 = vmul.f32 %v3374_v63, %v3371_v21  ;;  %v1247_v36 = vpop.f32.mrb[27].mxu1  ;;  %v1317_v49 = vmul.f32 %v3374_v63, %v3374_v63 }
 0x273   : > { %v1318_v27 = vmul.f32 %v1247_v36, %v1237_v24  ;;  %v4625_v51 = vpop.f32.mrb[38].mxu0  ;;  %v1316_v0 = vmul.f32 %v1247_v36, %v1247_v36 }
 0x274   : > { %v4627_v1 = vpop.f32.mrb[39].mxu0 }
 0x275   : > { %v3377_v32 = vpop.f32.mrb[28].mxu1 }
 0x276   : > { %v3896_v55 = vpop.eup %3895  ;;  %v1321_v28 = vsub.f32 %v3377_v32, %v1315_v30  ;;  %v1257_v42 = vpop.f32.mrb[29].mxu1 }
 0x277   : > { %v3898_v46 = vpop.eup %3897  ;;  %v1309_v47 = vmul.f32 %v3896_v55, %v1301_v3  ;;  %v1320_v39 = vsub.f32 %v1257_v42, %v1314_v5  ;;  %v4629_v43 = vpop.f32.mrb[40].mxu0 }
 0x278   : > { %v1308_v48 = vmul.f32 %v3898_v46, %v1300_v26  ;;  %v4631_v50 = vpop.f32.mrb[41].mxu0 }
 0x279   : > { %v1311_v31 = vmul.f32 %v1309_v47, %v1309_v47  ;;  %v3380_v33 = vpop.f32.mrb[30].mxu1 }
 0x27a   : > { %v1310_v38 = vmul.f32 %v1308_v48, %v1308_v48  ;;  %v1323_v40 = vsub.f32 %v3380_v33, %v1317_v49  ;;  %v1267_v45 = vpop.f32.mrb[31].mxu1 }
 0x27b   : > { %v1313_v53 = vmul.f32 %v1311_v31, %v709_v29  ;;  %v1322_v54 = vsub.f32 %v1267_v45, %v1316_v0  ;;  %v4633_v56 = vpop.f32.mrb[42].mxu0 }
 0x27c   : > { %v1312_v57 = vmul.f32 %v1310_v38, %v708_v37  ;;  %v1331_v58 = vadd.f32 %v1323_v40, %v1321_v28  ;;  %v4635_v59 = vpop.f32.mrb[43].mxu0 }
 0x27d   : > { %v1330_v60 = vadd.f32 %v1322_v54, %v1320_v39  ;;  %v3383_v61 = vpop.f32.mrb[32].mxu1 }
 0x27e   : > { %v1333_v62 = vadd.f32 0.0009, %v1331_v58  ;;  %v1325_v4 = vsub.f32 %v3383_v61, %v1319_v35  ;;  %v1277_v41 = vpop.f32.mrb[33].mxu1 }
 0x27f   : > { %v1332_v6 = vadd.f32 0.0009, %v1330_v60  ;;  %v1324_v8 = vsub.f32 %v1277_v41, %v1318_v27  ;;  %v4637_v9 = vpop.f32.mrb[44].mxu0 }
 0x280   : > { %3899 = vrcp.f32 %v1333_v62  ;;  %v4639_v44 = vpop.f32.mrb[45].mxu0  ;;  %v1327_v17 = vmul.f32 2.0, %v1325_v4 }
 0x281   : > { %3901 = vrcp.f32 %v1332_v6  ;;  %v3428_v11 = vpop.f32.mrb[34].mxu1  ;;  %v1326_v19 = vmul.f32 2.0, %v1324_v8 }
 0x282   : > { %v1715_v12 = vmul.f32 %v3428_v11, %v3425_v23  ;;  %v1671_v14 = vpop.f32.mrb[35].mxu1  ;;  %v1713_v63 = vmul.f32 %v3428_v11, %v3428_v11  ;;  %v1329_v35 = vadd.f32 0.0009, %v1327_v17 }
 0x283   : > { %v1714_v7 = vmul.f32 %v1671_v14, %v1661_v52  ;;  %v2457_v15 = vpop.f32.mrb[46].mxu0  ;;  %v1712_v36 = vmul.f32 %v1671_v14, %v1671_v14  ;;  %v1328_v2 = vadd.f32 0.0009, %v1326_v19 }
 0x284   : > { %v2459_v13 = vpop.f32.mrb[47].mxu0  ;;  %3532 = vmatprep.mubr.f32.mxu0 %v2457_v15 }
 0x285   : > { %v3431_v16 = vpop.f32.mrb[36].mxu1 }
 0x286   : > { %v1717_v20 = vsub.f32 %v3431_v16, %v1711_v10  ;;  %v1681_v21 = vpop.f32.mrb[37].mxu1 }
 0x287   : > { %v1716_v24 = vsub.f32 %v1681_v21, %v1710_v18  ;;  %v2463_v22 = vpop.f32.mrb[48].mxu0 }
 0x288   : > { %3533 = vmatmul.mubr.f32.vlgmr.msra.gmra.mrb[62].mxu0 %v2463_v22  ;;  %v2465_v25 = vpop.f32.mrb[49].mxu0 }
 0x289   : > { %v3434_v27 = vpop.f32.mrb[38].mxu1  ;;  %3535 = vmatprep.mubr.f32.mxu0 %v2459_v13 }
 0x28a   : > { %v3900_v30 = vpop.eup %3899  ;;  %v1719_v23 = vsub.f32 %v3434_v27, %v1713_v63  ;;  %v1691_v3 = vpop.f32.mrb[39].mxu1 }
 0x28b   : > { %v3902_v5 = vpop.eup %3901  ;;  %v1337_v32 = vmul.f32 %v3900_v30, %v1329_v35  ;;  %v1718_v52 = vsub.f32 %v1691_v3, %v1712_v36  ;;  %v2534_v55 = vpop.f32.mrb[50].mxu0 }
 0x28c   : > { %v1336_v34 = vmul.f32 %v3902_v5, %v1328_v2  ;;  %v1727_v26 = vadd.f32 %v1719_v23, %v1717_v20  ;;  %3536 = vmatmul.mubr.f32.gmra.mrb[64].mxu0 %v2465_v25  ;;  %v2536_v28 = vpop.f32.mrb[51].mxu0 }
 0x28d   : > { %v1339_v42 = vmul.f32 %v1337_v32, %v1313_v53  ;;  %v1726_v46 = vadd.f32 %v1718_v52, %v1716_v24  ;;  %v3437_v47 = vpop.f32.mrb[40].mxu1  ;;  %3538 = vmatprep.mubr.f32.mxu0 %v2534_v55 }
 0x28e   : > { %v1338_v39 = vmul.f32 %v1336_v34, %v1312_v57  ;;  %v1729_v48 = vadd.f32 0.0009, %v1727_v26  ;;  %v1721_v49 = vsub.f32 %v3437_v47, %v1715_v12  ;;  %v1701_v29 = vpop.f32.mrb[41].mxu1 }
 0x28f   : > { %v1728_v31 = vadd.f32 0.0009, %v1726_v46  ;;  %v1720_v0 = vsub.f32 %v1701_v29, %v1714_v7  ;;  %v2540_v33 = vpop.f32.mrb[52].mxu0 }
 0x290   : > { %3903 = vrcp.f32 %v1729_v48  ;;  %3539 = vmatmul.mubr.f32.gmra.mrb[66].mxu0 %v2540_v33  ;;  %v2542_v37 = vpop.f32.mrb[53].mxu0  ;;  %v1723_v54 = vmul.f32 2.0, %v1721_v49 }
 0x291   : > { %3905 = vrcp.f32 %v1728_v31  ;;  %v1815_v38 = vpop.f32.mrb[42].mxu1  ;;  %3541 = vmatprep.mubr.f32.mxu0 %v2536_v28  ;;  %v1722_v57 = vmul.f32 2.0, %v1720_v0 }
 0x292   : > { %v1817_v40 = vpop.f32.mrb[43].mxu1  ;;  %3470 = vmatprep.mubr.f32.mxu1 %v1815_v38  ;;  %v1725_v4 = vadd.f32 0.0009, %v1723_v54 }
 0x293   : > { %v2611_v45 = vpop.f32.mrb[54].mxu0  ;;  %v1724_v8 = vadd.f32 0.0009, %v1722_v57 }
 0x294   : > { %3542 = vmatmul.mubr.f32.gmra.mrb[68].mxu0 %v2542_v37  ;;  %v2613_v53 = vpop.f32.mrb[55].mxu0 }
 0x295   : > { %v1821_v58 = vpop.f32.mrb[44].mxu1  ;;  %3544 = vmatprep.mubr.f32.mxu0 %v2611_v45 }
 0x296   : > { %v1823_v60 = vpop.f32.mrb[45].mxu1  ;;  %3471 = vmatmul.mubr.f32.vlgmr.msra.gmra.mrb[54].mxu1 %v1821_v58 }
 0x297   : > { %3473 = vmatprep.mubr.f32.mxu1 %v1817_v40  ;;  %v2617_v61 = vpop.f32.mrb[56].mxu0 }
 0x298   : > { %3545 = vmatmul.mubr.f32.gmra.mrb[70].mxu0 %v2617_v61  ;;  %v2619_v62 = vpop.f32.mrb[57].mxu0 }
 0x299   : > { %v1892_v41 = vpop.f32.mrb[46].mxu1  ;;  %3547 = vmatprep.mubr.f32.mxu0 %v2613_v53 }
 0x29a   : > { %v3904_v6 = vpop.eup %3903  ;;  %v1894_v11 = vpop.f32.mrb[47].mxu1  ;;  %3474 = vmatmul.mubr.f32.gmra.mrb[56].mxu1 %v1823_v60 }
 0x29b   : > { %v3906_v12 = vpop.eup %3905  ;;  %v1733_v14 = vmul.f32 %v3904_v6, %v1725_v4  ;;  %3476 = vmatprep.mubr.f32.mxu1 %v1892_v41  ;;  %v2688_v7 = vpop.f32.mrb[58].mxu0 }
 0x29c   : > { %v1732_v15 = vmul.f32 %v3906_v12, %v1724_v8  ;;  %3548 = vmatmul.mubr.f32.gmra.mrb[72].mxu0 %v2619_v62  ;;  %v2690_v10 = vpop.f32.mrb[59].mxu0 }
 0x29d   : > { %v1735_v13 = vmul.f32 %v1733_v14, %v1733_v14  ;;  %v1898_v17 = vpop.f32.mrb[48].mxu1  ;;  %3550 = vmatprep.mubr.f32.mxu0 %v2688_v7 }
 0x29e   : > { %v1734_v18 = vmul.f32 %v1732_v15, %v1732_v15  ;;  %v1900_v16 = vpop.f32.mrb[49].mxu1  ;;  %3477 = vmatmul.mubr.f32.gmra.mrb[58].mxu1 %v1898_v17 }
 0x29f   : > { %v1737_v19 = vmul.f32 %v1735_v13, %v1733_v14  ;;  %3479 = vmatprep.mubr.f32.mxu1 %v1894_v11  ;;  %v2694_v20 = vpop.f32.mrb[60].mxu0 }
 0x2a0   : > { %v1736_v21 = vmul.f32 %v1734_v18, %v1732_v15  ;;  %v2696_v24 = vpop.f32.mrb[61].mxu0 }
 0x2a1   : > { %v2046_v22 = vpop.f32.mrb[50].mxu1  ;;  %v4641_v63 = vmul.f32 %v1737_v19, %v1339_v42 }
 0x2a2   : > { %3480 = vmatmul.mubr.f32.gmra.mrb[60].mxu1 %v1900_v16  ;;  %v2048_v25 = vpop.f32.mrb[51].mxu1  ;;  %v4643_v35 = vmul.f32 %v1736_v21, %v1338_v39 }
 0x2a3   : > { %3482 = vmatprep.mubr.f32.mxu1 %v4625_v51 }
 0x2a4   : > { %3551 = vmatmul.mubr.f32.gmra.mrb[72].mxu0 %v2694_v20 }
 0x2a5   : > { %v2052_v36 = vpop.f32.mrb[52].mxu1  ;;  %3553 = vmatprep.mubr.f32.mxu0 %v2690_v10 }
 0x2a6   : > { %3483 = vmatmul.mubr.f32.gmra.mrb[62].mxu1 %v4629_v43  ;;  %v2054_v27 = vpop.f32.mrb[53].mxu1 }
 0x2a7   : > { %3485 = vmatprep.mubr.f32.mxu1 %v4627_v1 }
 0x2aa   : > { %3486 = vmatmul.mubr.f32.gmra.mrb[64].mxu1 %v4631_v50 }
 0x2ab   : > { %3488 = vmatprep.mubr.f32.mxu1 %v2046_v22 }
 0x2ac   : > { %3554 = vmatmul.mubr.f32.gmra.mrb[72].mxu0 %v2696_v24 }
 0x2ae   : > { %3489 = vmatmul.mubr.f32.gmra.mrb[66].mxu1 %v2052_v36 }
 0x2af   : > { %3491 = vmatprep.mubr.f32.mxu1 %v2048_v25 }
 0x2b2   : > { %3492 = vmatmul.mubr.f32.gmra.mrb[68].mxu1 %v2054_v27 }
 0x2b3   : > { %3494 = vmatprep.mubr.f32.mxu1 %v4633_v56 }
 0x2b6   : > { %3495 = vmatmul.mubr.f32.gmra.mrb[70].mxu1 %v4637_v9 }
 0x2b7   : > { %3497 = vmatprep.mubr.f32.mxu1 %v4635_v59 }
 0x2ba   : > { %3498 = vmatmul.mubr.f32.gmra.mrb[72].mxu1 %v4639_v44 }
 0x35b   : > { %v3534_v51 = vpop.f32.mrb[62].mxu0 }
 0x35c   : > { %v2782_v43 = vpop.f32.mrb[63].mxu0  ;;  %v2862_v30 = vmul.f32 %v3534_v51, %v3534_v51 }
 0x35d   : > { %v2861_v2 = vmul.f32 %v2782_v43, %v2782_v43 }
 0x35f   : > { %v3537_v1 = vpop.f32.mrb[64].mxu0 }
 0x360   : > { %v2864_v23 = vmul.f32 %v3537_v1, %v3537_v1  ;;  %v2866_v50 = vmul.f32 %v3537_v1, %v3534_v51  ;;  %v2792_v3 = vpop.f32.mrb[65].mxu0 }
 0x361   : > { %v2863_v5 = vmul.f32 %v2792_v3, %v2792_v3  ;;  %v2865_v32 = vmul.f32 %v2792_v3, %v2782_v43 }
 0x362   : > { %v2878_v52 = vadd.f32 %v2864_v23, %v2862_v30  ;;  %v2874_v39 = vmul.f32 2.0, %v2866_v50 }
 0x363   : > { %v2877_v55 = vadd.f32 %v2863_v5, %v2861_v2  ;;  %v3540_v34 = vpop.f32.mrb[66].mxu0  ;;  %v2873_v29 = vmul.f32 2.0, %v2865_v32 }
 0x364   : > { %v2880_v56 = vadd.f32 0.0001, %v2878_v52  ;;  %v2868_v26 = vsub.f32 %v3540_v34, %v2862_v30  ;;  %v2802_v9 = vpop.f32.mrb[67].mxu0  ;;  %v2876_v53 = vadd.f32 0.0001, %v2874_v39 }
 0x365   : > { %v2879_v28 = vadd.f32 0.0001, %v2877_v55  ;;  %v2867_v59 = vsub.f32 %v2802_v9, %v2861_v2  ;;  %v2875_v61 = vadd.f32 0.0001, %v2873_v29 }
 0x366   : > { %3907 = vrcp.f32 %v2880_v56 }
 0x367   : > { %3909 = vrcp.f32 %v2879_v28  ;;  %v3543_v44 = vpop.f32.mrb[68].mxu0 }
 0x368   : > { %v2870_v42 = vsub.f32 %v3543_v44, %v2864_v23  ;;  %v2812_v46 = vpop.f32.mrb[69].mxu0 }
 0x369   : > { %v3472_v47 = vpop.f32.mrb[54].mxu1  ;;  %v2869_v48 = vsub.f32 %v2812_v46, %v2863_v5 }
 0x36a   : > { %v2217_v49 = vpop.f32.mrb[55].mxu1  ;;  %v2890_v31 = vadd.f32 %v2870_v42, %v2868_v26  ;;  %v2317_v41 = vmul.f32 %v3472_v47, %v3472_v47 }
 0x36b   : > { %v2889_v0 = vadd.f32 %v2869_v48, %v2867_v59  ;;  %v3546_v33 = vpop.f32.mrb[70].mxu0  ;;  %v2316_v8 = vmul.f32 %v2217_v49, %v2217_v49 }
 0x36c   : > { %v2892_v37 = vadd.f32 0.0009, %v2890_v31  ;;  %v2872_v38 = vsub.f32 %v3546_v33, %v2866_v50  ;;  %v2822_v40 = vpop.f32.mrb[71].mxu0 }
 0x36d   : > { %v3475_v45 = vpop.f32.mrb[56].mxu1  ;;  %v2891_v54 = vadd.f32 0.0009, %v2889_v0  ;;  %v2871_v58 = vsub.f32 %v2822_v40, %v2865_v32 }
 0x36e   : > { %v2321_v57 = vmul.f32 %v3475_v45, %v3472_v47  ;;  %v2227_v60 = vpop.f32.mrb[57].mxu1  ;;  %3911 = vrcp.f32 %v2892_v37  ;;  %v2886_v14 = vmul.f32 2.0, %v2872_v38  ;;  %v2319_v18 = vmul.f32 %v3475_v45, %v3475_v45 }
 0x36f   : > { %v2320_v62 = vmul.f32 %v2227_v60, %v2217_v49  ;;  %3913 = vrcp.f32 %v2891_v54  ;;  %v2885_v13 = vmul.f32 2.0, %v2871_v58  ;;  %v2318_v16 = vmul.f32 %v2227_v60, %v2227_v60 }
 0x370   : > { %v3908_v4 = vpop.eup %3907  ;;  %v2888_v20 = vadd.f32 0.0009, %v2886_v14 }
 0x371   : > { %v3910_v6 = vpop.eup %3909  ;;  %v4653_v11 = vmul.f32 %v3908_v4, %v2876_v53  ;;  %v3478_v12 = vpop.f32.mrb[58].mxu1  ;;  %v2887_v22 = vadd.f32 0.0009, %v2885_v13 }
 0x372   : > { %v4655_v7 = vmul.f32 %v3910_v6, %v2875_v61  ;;  %v2323_v15 = vsub.f32 %v3478_v12, %v2317_v41  ;;  %v2237_v10 = vpop.f32.mrb[59].mxu1 }
 0x373   : > { %v2322_v17 = vsub.f32 %v2237_v10, %v2316_v8 }
 0x375   : > { %v3481_v19 = vpop.f32.mrb[60].mxu1 }
 0x376   : > { %v2325_v21 = vsub.f32 %v3481_v19, %v2319_v18  ;;  %v2247_v24 = vpop.f32.mrb[61].mxu1 }
 0x377   : > { %v2324_v25 = vsub.f32 %v2247_v24, %v2318_v16 }
 0x378   : > { %v3912_v36 = vpop.eup %3911  ;;  %v2333_v27 = vadd.f32 %v2325_v21, %v2323_v15 }
 0x379   : > { %v3914_v51 = vpop.eup %3913  ;;  %v2332_v43 = vadd.f32 %v2324_v25, %v2322_v17  ;;  %v3484_v30 = vpop.f32.mrb[62].mxu1  ;;  %v4657_v2 = vmul.f32 %v3912_v36, %v2888_v20  ;;  %v2903_v36 = vmul.f32 %v4655_v7, %v4655_v7 }
 0x37a   : > { %v2335_v1 = vadd.f32 0.0009, %v2333_v27  ;;  %v2327_v23 = vsub.f32 %v3484_v30, %v2321_v57  ;;  %v2257_v50 = vpop.f32.mrb[63].mxu1  ;;  %v2895_v3 = vmul.f32 %v3914_v51, %v2887_v22  ;;  %v2904_v22 = vmul.f32 %v4653_v11, %v4653_v11 }
 0x37b   : > { %v2334_v5 = vadd.f32 0.0009, %v2332_v43  ;;  %v2326_v32 = vsub.f32 %v2257_v50, %v2320_v62 }
 0x37c   : > { %3915 = vrcp.f32 %v2335_v1  ;;  %v2329_v26 = vmul.f32 2.0, %v2327_v23  ;;  %v2897_v21 = vmul.f32 %v2895_v3, %v2895_v3  ;;  %v2906_v50 = vmul.f32 %v2904_v22, %v4653_v11 }
 0x37d   : > { %3917 = vrcp.f32 %v2334_v5  ;;  %v3487_v52 = vpop.f32.mrb[64].mxu1  ;;  %v2328_v28 = vmul.f32 2.0, %v2326_v32  ;;  %v2905_v32 = vmul.f32 %v2903_v36, %v4655_v7 }
 0x37e   : > { %v2267_v55 = vpop.f32.mrb[65].mxu1  ;;  %v2343_v46 = vmul.f32 %v3487_v52, %v3487_v52  ;;  %v2331_v47 = vadd.f32 0.0009, %v2329_v26  ;;  %v2899_v30 = vmul.f32 %v2897_v21, %v2895_v3 }
 0x37f   : > { %v3555_v34 = vpop.f32.mrb[72].mxu0  ;;  %v2342_v39 = vmul.f32 %v2267_v55, %v2267_v55  ;;  %v2330_v29 = vadd.f32 0.0009, %v2328_v28 }
 0x380   : > { %v2852_v56 = vpop.f32.mrb[73].mxu0 }
 0x381   : > { %v3490_v9 = vpop.f32.mrb[66].mxu1 }
 0x382   : > { %v2347_v59 = vmul.f32 %v3490_v9, %v3487_v52  ;;  %v2277_v44 = vpop.f32.mrb[67].mxu1  ;;  %v2345_v45 = vmul.f32 %v3490_v9, %v3490_v9  ;;  %v2928_v52 = vlaneseq  ;;  %v2911_v9 = vmul.f32 0.33333334, %v2852_v56 }
 0x383   : > { %v2346_v42 = vmul.f32 %v2277_v44, %v2267_v55  ;;  %v2344_v54 = vmul.f32 %v2277_v44, %v2277_v44  ;;  %v2912_v55 = vmul.f32 0.33333334, %v3555_v34 }
 0x385   : > { %v3493_v48 = vpop.f32.mrb[68].mxu1 }
 0x386   : > { %v3916_v49 = vpop.eup %3915  ;;  %v2349_v31 = vsub.f32 %v3493_v48, %v2343_v46  ;;  %v2287_v0 = vpop.f32.mrb[69].mxu1 }
 0x387   : > { %v3918_v33 = vpop.eup %3917  ;;  %v2339_v37 = vmul.f32 %v3916_v49, %v2331_v47  ;;  %v2348_v38 = vsub.f32 %v2287_v0, %v2342_v39  ;;  %v2920_v47 = vmul.f32 0.975, %v2912_v55  ;;  %v2919_v39 = vmul.f32 0.975, %v2911_v9 }
 0x388   : > { %v2338_v40 = vmul.f32 %v3918_v33, %v2330_v29 }
 0x389   : > { %v2341_v53 = vmul.f32 %v2339_v37, %v4641_v63  ;;  %v3496_v58 = vpop.f32.mrb[70].mxu1 }
 0x38a   : > { %v2340_v57 = vmul.f32 %v2338_v40, %v4643_v35  ;;  %v2351_v60 = vsub.f32 %v3496_v58, %v2345_v45  ;;  %v2297_v61 = vpop.f32.mrb[71].mxu1  ;;  %v2898_v35 = vmul.f32 %v4657_v2, %v4657_v2 }
 0x38b   : > { %v2350_v62 = vsub.f32 %v2297_v61, %v2344_v54 }
 0x38c   : > { %v2359_v4 = vadd.f32 %v2351_v60, %v2349_v31  ;;  %v2900_v51 = vmul.f32 %v2898_v35, %v4657_v2 }
 0x38d   : > { %v2358_v41 = vadd.f32 %v2350_v62, %v2348_v38  ;;  %v3499_v6 = vpop.f32.mrb[72].mxu1 }
 0x38e   : > { %v2361_v8 = vadd.f32 0.0009, %v2359_v4  ;;  %v2353_v12 = vsub.f32 %v3499_v6, %v2347_v59  ;;  %v2307_v14 = vpop.f32.mrb[73].mxu1 }
 0x38f   : > { %v2360_v15 = vadd.f32 0.0009, %v2358_v41  ;;  %v2352_v10 = vsub.f32 %v2307_v14, %v2346_v42  ;;  %v2929_v42 = vand.u32 127, %v2928_v52 }
 0x390   : > { %3919 = vrcp.f32 %v2361_v8  ;;  %v2355_v13 = vmul.f32 2.0, %v2353_v12 }
 0x391   : > { %3921 = vrcp.f32 %v2360_v15  ;;  %v2354_v17 = vmul.f32 2.0, %v2352_v10  ;;  %vm2932_vm1 = vcmp.lt.s32.totalorder %v2929_v42, 16 }
 0x392   : > { %v2357_v63 = vadd.f32 0.0009, %v2355_v13 }
 0x393   : > { %v2356_v16 = vadd.f32 0.0009, %v2354_v17 }
 0x39a   : > { %v3920_v18 = vpop.eup %3919 }
 0x39b   : > { %v3922_v19 = vpop.eup %3921  ;;  %v2365_v20 = vmul.f32 %v3920_v18, %v2357_v63 }
 0x39c   : > { %v2364_v24 = vmul.f32 %v3922_v19, %v2356_v16 }
 0x39d   : > { %v2367_v25 = vmul.f32 %v2365_v20, %v2365_v20 }
 0x39e   : > { %v2366_v27 = vmul.f32 %v2364_v24, %v2364_v24 }
 0x39f   : > { %v2369_v43 = vmul.f32 %v2367_v25, %v2341_v53 }
 0x3a0   : > { %v2368_v1 = vmul.f32 %v2366_v27, %v2340_v57 }
 0x3a1   : > { %v2902_v23 = vmul.f32 %v2900_v51, %v2369_v43 }
 0x3a2   : > { %v2901_v5 = vmul.f32 %v2899_v30, %v2368_v1 }
 0x3a3   : > { %v2914_v26 = vmul.f32 %v2906_v50, %v2902_v23 }
 0x3a4   : > { %v2913_v28 = vmul.f32 %v2905_v32, %v2901_v5 }
 0x3a5   : > { %v2916_v59 = vsub.f32 1.0, %v2914_v26 }
 0x3a6   : > { %v2915_v44 = vsub.f32 1.0, %v2913_v28 }
 0x3a7   : > { %v2918_v46 = vmul.f32 0.025, %v2916_v59 }
 0x3a8   : > { %v2917_v2 = vmul.f32 0.025, %v2915_v44 }
 0x3a9   : > { %v2922_v3 = vadd.f32 %v2920_v47, %v2918_v46 }
 0x3aa   : > { %v2921_v48 = vadd.f32 %v2919_v39, %v2917_v2 }
 0x3ab   : > { %v2924_v11 = vmul.f32 200.0, %v2922_v3 }
 0x3ac   : > { %v2923_v49 = vmul.f32 200.0, %v2921_v48 }
 0x3ad   : > { %v2936_v7 = vsel %vm2932_vm1, %v2924_v11, 0.0 }
 0x3ae   : > { %v2935_v29 = vsel %vm2932_vm1, %v2923_v49, 0.0 }
 0x3af   : > { %v2937_v34 = vadd.f32 %v2936_v7, %v2935_v29 }
 0x3b1   : > { %2938 = vadd.xlane.f32.xlu0 %v2937_v34 }
 0x43e   : > { %v2939_v56 = vpop.xlane.xlu0 %2938 }
 0x43f   : > { %v2940_v31 = vrot.slane %v2939_v56, 4 }
 0x441   : > { %v2941_v0 = vadd.f32 %v2940_v31, %v2939_v56 }
 0x443   : > { %v2942_v33 = vrot.slane %v2941_v0, 2 }
 0x445   : > { %v2943_v37 = vadd.f32 %v2942_v33, %v2941_v0 }
 0x447   : > { %v2944_v38 = vrot.slane %v2943_v37, 1 }
 0x449   : > { %v2945_v40 = vadd.f32 %v2944_v38, %v2943_v37 }
 0x44b   : > { %3821 = vpush %v2945_v40 }
 0x47c   : > { %s3822_s5 = spop %3821 }
 0x47d   : > { %v2947_v45 = vstv %s3822_s5 }
 0x47e   : > { %2950 = vst.msk [vmem:[%s282_s10] sm:$0x1] %vm2949_vm2, %v2947_v45 }
 0x47f PF: > { %p18_p12 = scmp.ge.s32.totalorder %s4218_s24, 4   ;;  %s4706_s15 = smov %s4077_s16 }
 0x480   : > { %s4707_s16 = smov %s4081_s17  ;;  %s4708_s17 = smov %s4229_s8 }
 0x481   : > { %s4709_s18 = smov %s4218_s24  ;;  %20 = sbr.rel (!%p18_p12) target bundleno = 6 (0x6), region = 105 }
 0x488   :  { %2968 = vsyncpa [#allocation3], 1 }
 0x489   :  { %2970 = vsyncpa [#allocation3 + $0x1], 1 }
 0x48a   :  { %2971 = vsyncpa [#allocation5], 1 }
 0x48b   :  { %2973 = vsyncpa [#allocation5 + $0x1], 1 }
 0x48c   :  { %2974 = vsyncpa [#allocation8], 1 }

</bundles_post_ra>
